<compile_context>
chip_gen: v6e
topology: v6e:2x2x1
jax: 0.10.0
libtpu: 0.0.40
codegen_flags: <defaults>
</compile_context>

<pallas_src>
import numpy as np

import jax
import jax.numpy as jnp
from jax.experimental import pallas as pl
from jax.experimental.pallas import tpu as pltpu


# ----------------------------------------------------------------------------
# VMEM budgeting helpers
# ----------------------------------------------------------------------------
def _vmem_limit_bytes():
    cap = None
    try:
        info = pltpu.get_tpu_info()
        cap = int(getattr(info, "vmem_capacity_bytes", 0)) or None
    except Exception:
        cap = None
    if cap is None:
        kind = ""
        try:
            kind = str(jax.devices()[0].device_kind).lower()
        except Exception:
            pass
        cap = 64 * 1024 * 1024 if "v7" in kind else 128 * 1024 * 1024
    # Leave headroom for compiler scratch; never request more than 96 MiB.
    return int(min(cap * 3 // 4, 96 * 1024 * 1024))


def _pick_tile_h(H, Wp, Cin, Cout, in_bytes, out_bytes, budget, n_batch,
                 min_steps=8):
    """Largest tile_h (multiple of 8) fitting VMEM, then shrunk until the grid
    has enough steps for pipelining / megacore (never below 8)."""
    lane = lambda c: -(-c // 128) * 128
    sub = lambda r: -(-r // 8) * 8
    cin_l, cout_l = lane(Cin), lane(Cout)

    def vmem_use(t):
        use = 2 * t * Wp * cin_l * in_bytes              # mid tile, double-buffered
        use += 2 * 2 * Wp * cin_l * in_bytes             # 1-row halos (top+bot), 2 bufs
        use += 2 * 9 * sub(Cin) * cout_l * in_bytes      # weights, 2 bufs
        use += 2 * t * Wp * cout_l * out_bytes           # output tile, 2 bufs
        use += (t + 2) * (Wp + 32) * cin_l * in_bytes    # padded staging scratch
        use += t * Wp * cout_l * 4                       # f32 accumulator scratch
        return use

    t = min(sub(H), 1024)
    t -= t % 8
    t = max(t, 8)
    while t > 8 and vmem_use(t) > budget:
        t -= 8
    # Guarantee enough grid steps to hide DMA and feed both v7x TensorCores.
    while t > 8 and n_batch * (-(-H // t)) < min_steps:
        t -= 8
    return t


# ----------------------------------------------------------------------------
# Kernel
# ----------------------------------------------------------------------------
def _make_conv_kernel(tH, Wp, Cin, Cout, compute_dtype, pad):
    def kernel(top_ref, mid_ref, bot_ref, w_ref, o_ref, xpad_ref, acc_ref):
        # top_ref: (1, 1, Wp, Cin)   row i*tH - 1 (clamped)
        # mid_ref: (1, tH, Wp, Cin)  tile interior
        # bot_ref: (1, 1, Wp, Cin)   row (i+1)*tH (clamped)
        # w_ref:   (9, Cin, Cout)    3x3 taps, k = dy*3 + dx
        # o_ref:   (1, tH, Wp, Cout)
        # xpad_ref:(tH+2, Wp+2*pad, Cin) staging scratch, interior at column `pad`
        # acc_ref: (tH, Wp, Cout) f32 accumulator
        i = pl.program_id(1)
        last = pl.num_programs(1) - 1

        # Aligned zero bands supplying the left/right zero halo columns
        # (columns pad-1 and pad+Wp are the only ones actually read).
        xpad_ref[:, 0:pad, :] = jnp.zeros((tH + 2, pad, Cin), compute_dtype)
        xpad_ref[:, pad + Wp:2 * pad + Wp, :] = jnp.zeros(
            (tH + 2, pad, Cin), compute_dtype)

        # Interior rows: aligned store (column offset `pad`, rows on major axis).
        xpad_ref[1:tH + 1, pad:pad + Wp, :] = mid_ref[0]

        # Top halo row (global row i*tH - 1), zero at the image top.
        @pl.when(i > 0)
        def _():
            xpad_ref[0:1, pad:pad + Wp, :] = top_ref[0]

        @pl.when(i == 0)
        def _():
            xpad_ref[0:1, pad:pad + Wp, :] = jnp.zeros((1, Wp, Cin),
                                                       compute_dtype)

        # Bottom halo row (global row (i+1)*tH), zero at the image bottom.
        @pl.when(i < last)
        def _():
            xpad_ref[tH + 1:tH + 2, pad:pad + Wp, :] = bot_ref[0]

        @pl.when(i == last)
        def _():
            xpad_ref[tH + 1:tH + 2, pad:pad + Wp, :] = jnp.zeros(
                (1, Wp, Cin), compute_dtype)

        # 9-tap direct conv: each tap is an explicit 2-D MXU matmul accumulated
        # into the VMEM f32 scratch (no carried-value spills).
        for k in range(9):
            dy, dx = k // 3, k % 3
            xs = xpad_ref[dy:dy + tH, pad - 1 + dx:pad - 1 + dx + Wp, :]
            part = jnp.dot(xs.reshape(tH * Wp, Cin), w_ref[k],
                           preferred_element_type=jnp.float32)
            part = part.reshape(tH, Wp, Cout)
            if k == 0:
                acc_ref[...] = part
            else:
                acc_ref[...] += part

        o_ref[0] = acc_ref[...].astype(o_ref.dtype)

    return kernel


# ----------------------------------------------------------------------------
# Conv wrapper (NHWC in, NHWC out)
# ----------------------------------------------------------------------------
def conv3x3_pallas(x_nhwc, w_taps, out_dtype, tile_h=None):
    """3x3 stride-1 pad-1 conv, no bias. x_nhwc: (N,H,W,Cin), w_taps: (9,Cin,Cout)."""
    N, H, W, Cin = x_nhwc.shape
    Cout = w_taps.shape[-1]
    cdt = x_nhwc.dtype

    in_bytes = jnp.dtype(cdt).itemsize
    out_bytes = jnp.dtype(out_dtype).itemsize
    pack = max(1, 4 // in_bytes)          # rows packed per sublane for cdt
    sub_mult = 8 * pack                   # aligned row granularity on sublane axis

    # Pad W to the sublane-packing multiple; the zero columns also provide the
    # right-edge zero halo of the last real column.
    Wp = -(-W // sub_mult) * sub_mult

    vmem_limit = _vmem_limit_bytes()
    if tile_h is None:
        tile_h = _pick_tile_h(
            H, Wp, Cin, Cout, in_bytes, out_bytes,
            budget=max(vmem_limit - 4 * 1024 * 1024, 8 * 1024 * 1024),
            n_batch=N)
    assert tile_h % 8 == 0 and tile_h >= 8, tile_h
    tH = tile_h

    # Pad H up to a multiple of tile_h (zero tail rows double as the bottom
    # zero halo of the last real row; extra outputs are dropped below).
    Hp = -(-H // tH) * tH
    if Hp != H or Wp != W:
        x_nhwc = jnp.pad(x_nhwc, ((0, 0), (0, Hp - H), (0, Wp - W), (0, 0)))

    nH = Hp // tH
    grid = (N, nH)

    def mid_map(n, i):
        return (n, i, 0, 0)

    def top_map(n, i):          # exact 1-row block ending above the tile
        return (n, jnp.maximum(i * tH - 1, 0), 0, 0)

    def bot_map(n, i):          # exact 1-row block just below the tile
        return (n, jnp.minimum((i + 1) * tH, Hp - 1), 0, 0)

    cost = pl.CostEstimate(
        flops=2 * N * Hp * Wp * 9 * Cin * Cout,
        transcendentals=0,
        bytes_accessed=(N * (Hp + 2 * nH) * Wp * Cin * in_bytes
                        + 9 * Cin * Cout * in_bytes
                        + N * Hp * Wp * Cout * out_bytes),
    )

    y = pl.pallas_call(
        _make_conv_kernel(tH, Wp, Cin, Cout, cdt, pad=sub_mult),
        out_shape=jax.ShapeDtypeStruct((N, Hp, Wp, Cout), out_dtype),
        grid_spec=pltpu.PrefetchScalarGridSpec(
            num_scalar_prefetch=0,
            grid=grid,
            in_specs=[
                pl.BlockSpec((1, 1, Wp, Cin), top_map),      # 1-row top halo
                pl.BlockSpec((1, tH, Wp, Cin), mid_map),     # interior
                pl.BlockSpec((1, 1, Wp, Cin), bot_map),      # 1-row bottom halo
                # Constant index_map -> weights stay resident across steps.
                pl.BlockSpec((9, Cin, Cout), lambda n, i: (0, 0, 0)),
            ],
            out_specs=pl.BlockSpec((1, tH, Wp, Cout), mid_map),
            scratch_shapes=[
                pltpu.VMEM((tH + 2, Wp + 2 * sub_mult, Cin), cdt),
                pltpu.VMEM((tH, Wp, Cout), jnp.float32),
            ]),
        compiler_params=pltpu.CompilerParams(
            dimension_semantics=("parallel", "parallel"),
            vmem_limit_bytes=vmem_limit),
        cost_estimate=cost,
    )(x_nhwc, x_nhwc, x_nhwc, w_taps)

    if Hp != H or Wp != W:
        y = y[:, :H, :W]
    return y


# ----------------------------------------------------------------------------
# Full Upsample forward (NCHW in, NCHW out — matches the PyTorch module)
# ----------------------------------------------------------------------------
def upsample_forward(x_nchw, w_oihw, compute_dtype=None, tile_h=None):
    """x_nchw: (N, n_feat, H, W); w_oihw: (2*n_feat, n_feat, 3, 3).
    Returns (N, n_feat//2, 2H, 2W) = Conv2d(pad=1, no bias) + PixelShuffle(2)."""
    N, Cin, H, W = x_nchw.shape
    Cout = w_oihw.shape[0]
    C = Cout // 4                       # channels after PixelShuffle(2)
    cdt = jnp.dtype(compute_dtype) if compute_dtype is not None else x_nchw.dtype

    # One input transpose NCHW -> NHWC (channels on the lane dim for the MXU).
    x_nhwc = jnp.transpose(x_nchw, (0, 2, 3, 1)).astype(cdt)
    # (Cout, Cin, 3, 3) -> (3, 3, Cin, Cout) -> (9, Cin, Cout)
    w_taps = jnp.transpose(w_oihw, (2, 3, 1, 0)).reshape(9, Cin, Cout).astype(cdt)

    y = conv3x3_pallas(x_nhwc, w_taps, out_dtype=x_nchw.dtype, tile_h=tile_h)

    # PixelShuffle(2) + NHWC->NCHW as a SINGLE fused XLA transpose:
    #   out[n, c, 2h+i, 2w+j] = y[n, h, w, c*4 + i*2 + j]
    y6 = y.reshape(N, H, W, C, 2, 2)                 # free reshape
    out = jnp.transpose(y6, (0, 3, 1, 4, 2, 5))      # one copy: (N, C, H, 2, W, 2)
    return out.reshape(N, C, 2 * H, 2 * W)           # free reshape


# ----------------------------------------------------------------------------
# Host-side float64 reference (exact, avoids TPU matmul-precision ambiguity)
# ----------------------------------------------------------------------------
def _reference_upsample_np(x, w):
    x64 = np.asarray(x, np.float64)
    w64 = np.asarray(w, np.float64)
    N, Cin, H, W = x64.shape
    Cout = w64.shape[0]
    xp = np.pad(x64, ((0, 0), (0, 0), (1, 1), (1, 1)))
    y = np.zeros((N, Cout, H, W), np.float64)
    for dy in range(3):
        for dx in range(3):
            xs = xp[:, :, dy:dy + H, dx:dx + W]
            y += np.einsum('nihw,oi->nohw', xs, w64[:, :, dy, dx])
    C = Cout // 4
    y = y.reshape(N, C, 2, 2, H, W).transpose(0, 1, 4, 2, 5, 3)
    return y.reshape(N, C, 2 * H, 2 * W)


if __name__ == "__main__":
    key = jax.random.PRNGKey(0)
    k_x, k_w = jax.random.split(key)

    N, n_feat, H, W = 2, 4, 16, 16
    x = jax.random.normal(k_x, (N, n_feat, H, W), dtype=jnp.float32)
    w = jax.random.normal(k_w, (2 * n_feat, n_feat, 3, 3), dtype=jnp.float32) * 0.1

    ref = _reference_upsample_np(np.asarray(x), np.asarray(w))

    # f32 path, auto tile size (step-count floor picks tile_h=8 here, so the
    # multi-tile halo logic is exercised).
    out = jax.block_until_ready(upsample_forward(x, w))
    assert out.shape == (N, n_feat // 2, 2 * H, 2 * W), out.shape
    np.testing.assert_allclose(np.asarray(out, np.float64), ref,
                               rtol=5e-3, atol=5e-3)

    # Whole-image tile: single grid step along H (i==0 and i==last together).
    out_one = jax.block_until_ready(upsample_forward(x, w, tile_h=16))
    np.testing.assert_allclose(np.asarray(out_one, np.float64), ref,
                               rtol=5e-3, atol=5e-3)

    # bf16 compute path (halves input DMA); accumulation stays f32 on the MXU.
    out_bf16 = jax.block_until_ready(
        upsample_forward(x, w, compute_dtype=jnp.bfloat16))
    np.testing.assert_allclose(np.asarray(out_bf16, np.float64), ref,
                               rtol=3e-2, atol=3e-2)

    print("KERNEL_OK")
</pallas_src>

<mosaic_0001>
module attributes {stable_mosaic.version = 11 : i64} {
  func.func @kernel(%arg0: i32, %arg1: i32, %arg2: memref<1x1x16x4xf32, #tpu.memory_space<vmem>>, %arg3: memref<1x8x16x4xf32, #tpu.memory_space<vmem>>, %arg4: memref<1x1x16x4xf32, #tpu.memory_space<vmem>>, %arg5: memref<9x4x8xf32, #tpu.memory_space<vmem>>, %arg6: memref<1x8x16x8xf32, #tpu.memory_space<vmem>>, %arg7: memref<10x32x4xf32, #tpu.memory_space<vmem>>, %arg8: memref<8x16x8xf32, #tpu.memory_space<vmem>>) attributes {dimension_semantics = [#tpu.dimension_semantics<parallel>, #tpu.dimension_semantics<parallel>], iteration_bounds = array<i64: 2, 2>, scalar_prefetch = 0 : i64, scratch_operands = 2 : i64, tpu.core_type = #tpu.core_type<tc>, window_params = [{transform_indices = @transform_0, window_bounds = array<i64: 1, 1, 16, 4>}, {transform_indices = @transform_1, window_bounds = array<i64: 1, 8, 16, 4>}, {transform_indices = @transform_2, window_bounds = array<i64: 1, 1, 16, 4>}, {pipeline_mode = #tpu.pipeline_mode<synchronous>, transform_indices = @transform_3, window_bounds = array<i64: 9, 4, 8>}, {transform_indices = @transform_4, window_bounds = array<i64: 1, 8, 16, 8>}]} {
    %cst = arith.constant 0.000000e+00 : f32
    %0 = vector.broadcast %cst : f32 to vector<10x8x4xf32>
    %c0 = arith.constant 0 : index
    %c0_0 = arith.constant 0 : index
    %c0_1 = arith.constant 0 : index
    %1 = vector.load %arg7[%c0, %c0_0, %c0_1] : memref<10x32x4xf32, #tpu.memory_space<vmem>>, vector<10x8x4xf32>
    tpu.vector_store %arg7[%c0, %c0_0, %c0_1], %0 {strides = array<i32>} : memref<10x32x4xf32, #tpu.memory_space<vmem>>, vector<10x8x4xf32>,
    %cst_2 = arith.constant 0.000000e+00 : f32
    %2 = vector.broadcast %cst_2 : f32 to vector<10x8x4xf32>
    %c0_3 = arith.constant 0 : index
    %c24 = arith.constant 24 : index
    %c0_4 = arith.constant 0 : index
    %3 = vector.load %arg7[%c0_3, %c24, %c0_4] : memref<10x32x4xf32, #tpu.memory_space<vmem>>, vector<10x8x4xf32>
    tpu.vector_store %arg7[%c0_3, %c24, %c0_4], %2 {strides = array<i32>} : memref<10x32x4xf32, #tpu.memory_space<vmem>>, vector<10x8x4xf32>,
    %c0_5 = arith.constant 0 : index
    %c0_6 = arith.constant 0 : index
    %c0_7 = arith.constant 0 : index
    %c0_8 = arith.constant 0 : index
    %4 = vector.load %arg3[%c0_5, %c0_6, %c0_7, %c0_8] : memref<1x8x16x4xf32, #tpu.memory_space<vmem>>, vector<1x8x16x4xf32>
    %5 = vector.shape_cast %4 : vector<1x8x16x4xf32> to vector<8x16x4xf32>
    %c1 = arith.constant 1 : index
    %c8 = arith.constant 8 : index
    %c0_9 = arith.constant 0 : index
    %6 = vector.load %arg7[%c1, %c8, %c0_9] : memref<10x32x4xf32, #tpu.memory_space<vmem>>, vector<8x16x4xf32>
    tpu.vector_store %arg7[%c1, %c8, %c0_9], %5 {strides = array<i32>} : memref<10x32x4xf32, #tpu.memory_space<vmem>>, vector<8x16x4xf32>,
    %c0_i32 = arith.constant 0 : i32
    %7 = arith.cmpi sgt, %arg1, %c0_i32 : i32
    %8 = arith.extui %7 : i1 to i32
    %c0_i32_10 = arith.constant 0 : i32
    %9 = arith.cmpi ne, %8, %c0_i32_10 : i32
    scf.if %9 {
      %c0_130 = arith.constant 0 : index
      %c0_131 = arith.constant 0 : index
      %c0_132 = arith.constant 0 : index
      %c0_133 = arith.constant 0 : index
      %102 = vector.load %arg2[%c0_130, %c0_131, %c0_132, %c0_133] : memref<1x1x16x4xf32, #tpu.memory_space<vmem>>, vector<1x1x16x4xf32>
      %103 = vector.shape_cast %102 : vector<1x1x16x4xf32> to vector<1x16x4xf32>
      %c0_134 = arith.constant 0 : index
      %c8_135 = arith.constant 8 : index
      %c0_136 = arith.constant 0 : index
      %104 = vector.load %arg7[%c0_134, %c8_135, %c0_136] : memref<10x32x4xf32, #tpu.memory_space<vmem>>, vector<1x16x4xf32>
      tpu.vector_store %arg7[%c0_134, %c8_135, %c0_136], %103 {strides = array<i32>} : memref<10x32x4xf32, #tpu.memory_space<vmem>>, vector<1x16x4xf32>,
    } else {
    }
    %c0_i32_11 = arith.constant 0 : i32
    %10 = arith.cmpi eq, %arg1, %c0_i32_11 : i32
    %11 = arith.extui %10 : i1 to i32
    %c0_i32_12 = arith.constant 0 : i32
    %12 = arith.cmpi ne, %11, %c0_i32_12 : i32
    scf.if %12 {
      %cst_130 = arith.constant 0.000000e+00 : f32
      %102 = vector.broadcast %cst_130 : f32 to vector<1x16x4xf32>
      %c0_131 = arith.constant 0 : index
      %c8_132 = arith.constant 8 : index
      %c0_133 = arith.constant 0 : index
      %103 = vector.load %arg7[%c0_131, %c8_132, %c0_133] : memref<10x32x4xf32, #tpu.memory_space<vmem>>, vector<1x16x4xf32>
      tpu.vector_store %arg7[%c0_131, %c8_132, %c0_133], %102 {strides = array<i32>} : memref<10x32x4xf32, #tpu.memory_space<vmem>>, vector<1x16x4xf32>,
    } else {
    }
    %c1_i32 = arith.constant 1 : i32
    %13 = arith.cmpi slt, %arg1, %c1_i32 : i32
    %14 = arith.extui %13 : i1 to i32
    %c0_i32_13 = arith.constant 0 : i32
    %15 = arith.cmpi ne, %14, %c0_i32_13 : i32
    scf.if %15 {
      %c0_130 = arith.constant 0 : index
      %c0_131 = arith.constant 0 : index
      %c0_132 = arith.constant 0 : index
      %c0_133 = arith.constant 0 : index
      %102 = vector.load %arg4[%c0_130, %c0_131, %c0_132, %c0_133] : memref<1x1x16x4xf32, #tpu.memory_space<vmem>>, vector<1x1x16x4xf32>
      %103 = vector.shape_cast %102 : vector<1x1x16x4xf32> to vector<1x16x4xf32>
      %c9_134 = arith.constant 9 : index
      %c8_135 = arith.constant 8 : index
      %c0_136 = arith.constant 0 : index
      %104 = vector.load %arg7[%c9_134, %c8_135, %c0_136] : memref<10x32x4xf32, #tpu.memory_space<vmem>>, vector<1x16x4xf32>
      tpu.vector_store %arg7[%c9_134, %c8_135, %c0_136], %103 {strides = array<i32>} : memref<10x32x4xf32, #tpu.memory_space<vmem>>, vector<1x16x4xf32>,
    } else {
    }
    %c1_i32_14 = arith.constant 1 : i32
    %16 = arith.cmpi eq, %arg1, %c1_i32_14 : i32
    %17 = arith.extui %16 : i1 to i32
    %c0_i32_15 = arith.constant 0 : i32
    %18 = arith.cmpi ne, %17, %c0_i32_15 : i32
    scf.if %18 {
      %cst_130 = arith.constant 0.000000e+00 : f32
      %102 = vector.broadcast %cst_130 : f32 to vector<1x16x4xf32>
      %c9_131 = arith.constant 9 : index
      %c8_132 = arith.constant 8 : index
      %c0_133 = arith.constant 0 : index
      %103 = vector.load %arg7[%c9_131, %c8_132, %c0_133] : memref<10x32x4xf32, #tpu.memory_space<vmem>>, vector<1x16x4xf32>
      tpu.vector_store %arg7[%c9_131, %c8_132, %c0_133], %102 {strides = array<i32>} : memref<10x32x4xf32, #tpu.memory_space<vmem>>, vector<1x16x4xf32>,
    } else {
    }
    %c0_16 = arith.constant 0 : index
    %c7 = arith.constant 7 : index
    %c0_17 = arith.constant 0 : index
    %19 = vector.load %arg7[%c0_16, %c7, %c0_17] : memref<10x32x4xf32, #tpu.memory_space<vmem>>, vector<8x16x4xf32>
    %20 = vector.shape_cast %19 : vector<8x16x4xf32> to vector<128x4xf32>
    %c0_18 = arith.constant 0 : index
    %c0_19 = arith.constant 0 : index
    %c0_20 = arith.constant 0 : index
    %21 = vector.load %arg5[%c0_18, %c0_19, %c0_20] : memref<9x4x8xf32, #tpu.memory_space<vmem>>, vector<1x4x8xf32>
    %22 = vector.shape_cast %21 : vector<1x4x8xf32> to vector<4x8xf32>
    %cst_21 = arith.constant dense<0.000000e+00> : vector<128x8xf32>
    %23 = tpu.matmul %20, %22, %cst_21 {dimension_numbers = #tpu.dot_dimension_numbers<[1], [0], [0], [1], [0, 0, 1, 1], [], []>} : vector<128x4xf32>, vector<4x8xf32>, vector<128x8xf32> -> vector<128x8xf32>
    %24 = vector.shape_cast %23 : vector<128x8xf32> to vector<8x16x8xf32>
    %c0_22 = arith.constant 0 : index
    %c0_23 = arith.constant 0 : index
    %c0_24 = arith.constant 0 : index
    %25 = vector.load %arg8[%c0_22, %c0_23, %c0_24] : memref<8x16x8xf32, #tpu.memory_space<vmem>>, vector<8x16x8xf32>
    tpu.vector_store %arg8[%c0_22, %c0_23, %c0_24], %24 {strides = array<i32>} : memref<8x16x8xf32, #tpu.memory_space<vmem>>, vector<8x16x8xf32>,
    %c0_25 = arith.constant 0 : index
    %c8_26 = arith.constant 8 : index
    %c0_27 = arith.constant 0 : index
    %26 = vector.load %arg7[%c0_25, %c8_26, %c0_27] : memref<10x32x4xf32, #tpu.memory_space<vmem>>, vector<8x16x4xf32>
    %27 = vector.shape_cast %26 : vector<8x16x4xf32> to vector<128x4xf32>
    %c1_28 = arith.constant 1 : index
    %c0_29 = arith.constant 0 : index
    %c0_30 = arith.constant 0 : index
    %28 = vector.load %arg5[%c1_28, %c0_29, %c0_30] : memref<9x4x8xf32, #tpu.memory_space<vmem>>, vector<1x4x8xf32>
    %29 = vector.shape_cast %28 : vector<1x4x8xf32> to vector<4x8xf32>
    %cst_31 = arith.constant dense<0.000000e+00> : vector<128x8xf32>
    %30 = tpu.matmul %27, %29, %cst_31 {dimension_numbers = #tpu.dot_dimension_numbers<[1], [0], [0], [1], [0, 0, 1, 1], [], []>} : vector<128x4xf32>, vector<4x8xf32>, vector<128x8xf32> -> vector<128x8xf32>
    %31 = vector.shape_cast %30 : vector<128x8xf32> to vector<8x16x8xf32>
    %c0_32 = arith.constant 0 : index
    %c0_33 = arith.constant 0 : index
    %c0_34 = arith.constant 0 : index
    %32 = vector.load %arg8[%c0_32, %c0_33, %c0_34] : memref<8x16x8xf32, #tpu.memory_space<vmem>>, vector<8x16x8xf32>
    %33 = arith.addf %32, %31 : vector<8x16x8xf32>
    %c0_35 = arith.constant 0 : index
    %c0_36 = arith.constant 0 : index
    %c0_37 = arith.constant 0 : index
    %34 = vector.load %arg8[%c0_35, %c0_36, %c0_37] : memref<8x16x8xf32, #tpu.memory_space<vmem>>, vector<8x16x8xf32>
    tpu.vector_store %arg8[%c0_35, %c0_36, %c0_37], %33 {strides = array<i32>} : memref<8x16x8xf32, #tpu.memory_space<vmem>>, vector<8x16x8xf32>,
    %c0_38 = arith.constant 0 : index
    %c9 = arith.constant 9 : index
    %c0_39 = arith.constant 0 : index
    %35 = vector.load %arg7[%c0_38, %c9, %c0_39] : memref<10x32x4xf32, #tpu.memory_space<vmem>>, vector<8x16x4xf32>
    %36 = vector.shape_cast %35 : vector<8x16x4xf32> to vector<128x4xf32>
    %c2 = arith.constant 2 : index
    %c0_40 = arith.constant 0 : index
    %c0_41 = arith.constant 0 : index
    %37 = vector.load %arg5[%c2, %c0_40, %c0_41] : memref<9x4x8xf32, #tpu.memory_space<vmem>>, vector<1x4x8xf32>
    %38 = vector.shape_cast %37 : vector<1x4x8xf32> to vector<4x8xf32>
    %cst_42 = arith.constant dense<0.000000e+00> : vector<128x8xf32>
    %39 = tpu.matmul %36, %38, %cst_42 {dimension_numbers = #tpu.dot_dimension_numbers<[1], [0], [0], [1], [0, 0, 1, 1], [], []>} : vector<128x4xf32>, vector<4x8xf32>, vector<128x8xf32> -> vector<128x8xf32>
    %40 = vector.shape_cast %39 : vector<128x8xf32> to vector<8x16x8xf32>
    %c0_43 = arith.constant 0 : index
    %c0_44 = arith.constant 0 : index
    %c0_45 = arith.constant 0 : index
    %41 = vector.load %arg8[%c0_43, %c0_44, %c0_45] : memref<8x16x8xf32, #tpu.memory_space<vmem>>, vector<8x16x8xf32>
    %42 = arith.addf %41, %40 : vector<8x16x8xf32>
    %c0_46 = arith.constant 0 : index
    %c0_47 = arith.constant 0 : index
    %c0_48 = arith.constant 0 : index
    %43 = vector.load %arg8[%c0_46, %c0_47, %c0_48] : memref<8x16x8xf32, #tpu.memory_space<vmem>>, vector<8x16x8xf32>
    tpu.vector_store %arg8[%c0_46, %c0_47, %c0_48], %42 {strides = array<i32>} : memref<8x16x8xf32, #tpu.memory_space<vmem>>, vector<8x16x8xf32>,
    %c1_49 = arith.constant 1 : index
    %c7_50 = arith.constant 7 : index
    %c0_51 = arith.constant 0 : index
    %44 = vector.load %arg7[%c1_49, %c7_50, %c0_51] : memref<10x32x4xf32, #tpu.memory_space<vmem>>, vector<8x16x4xf32>
    %45 = vector.shape_cast %44 : vector<8x16x4xf32> to vector<128x4xf32>
    %c3 = arith.constant 3 : index
    %c0_52 = arith.constant 0 : index
    %c0_53 = arith.constant 0 : index
    %46 = vector.load %arg5[%c3, %c0_52, %c0_53] : memref<9x4x8xf32, #tpu.memory_space<vmem>>, vector<1x4x8xf32>
    %47 = vector.shape_cast %46 : vector<1x4x8xf32> to vector<4x8xf32>
    %cst_54 = arith.constant dense<0.000000e+00> : vector<128x8xf32>
    %48 = tpu.matmul %45, %47, %cst_54 {dimension_numbers = #tpu.dot_dimension_numbers<[1], [0], [0], [1], [0, 0, 1, 1], [], []>} : vector<128x4xf32>, vector<4x8xf32>, vector<128x8xf32> -> vector<128x8xf32>
    %49 = vector.shape_cast %48 : vector<128x8xf32> to vector<8x16x8xf32>
    %c0_55 = arith.constant 0 : index
    %c0_56 = arith.constant 0 : index
    %c0_57 = arith.constant 0 : index
    %50 = vector.load %arg8[%c0_55, %c0_56, %c0_57] : memref<8x16x8xf32, #tpu.memory_space<vmem>>, vector<8x16x8xf32>
    %51 = arith.addf %50, %49 : vector<8x16x8xf32>
    %c0_58 = arith.constant 0 : index
    %c0_59 = arith.constant 0 : index
    %c0_60 = arith.constant 0 : index
    %52 = vector.load %arg8[%c0_58, %c0_59, %c0_60] : memref<8x16x8xf32, #tpu.memory_space<vmem>>, vector<8x16x8xf32>
    tpu.vector_store %arg8[%c0_58, %c0_59, %c0_60], %51 {strides = array<i32>} : memref<8x16x8xf32, #tpu.memory_space<vmem>>, vector<8x16x8xf32>,
    %c1_61 = arith.constant 1 : index
    %c8_62 = arith.constant 8 : index
    %c0_63 = arith.constant 0 : index
    %53 = vector.load %arg7[%c1_61, %c8_62, %c0_63] : memref<10x32x4xf32, #tpu.memory_space<vmem>>, vector<8x16x4xf32>
    %54 = vector.shape_cast %53 : vector<8x16x4xf32> to vector<128x4xf32>
    %c4 = arith.constant 4 : index
    %c0_64 = arith.constant 0 : index
    %c0_65 = arith.constant 0 : index
    %55 = vector.load %arg5[%c4, %c0_64, %c0_65] : memref<9x4x8xf32, #tpu.memory_space<vmem>>, vector<1x4x8xf32>
    %56 = vector.shape_cast %55 : vector<1x4x8xf32> to vector<4x8xf32>
    %cst_66 = arith.constant dense<0.000000e+00> : vector<128x8xf32>
    %57 = tpu.matmul %54, %56, %cst_66 {dimension_numbers = #tpu.dot_dimension_numbers<[1], [0], [0], [1], [0, 0, 1, 1], [], []>} : vector<128x4xf32>, vector<4x8xf32>, vector<128x8xf32> -> vector<128x8xf32>
    %58 = vector.shape_cast %57 : vector<128x8xf32> to vector<8x16x8xf32>
    %c0_67 = arith.constant 0 : index
    %c0_68 = arith.constant 0 : index
    %c0_69 = arith.constant 0 : index
    %59 = vector.load %arg8[%c0_67, %c0_68, %c0_69] : memref<8x16x8xf32, #tpu.memory_space<vmem>>, vector<8x16x8xf32>
    %60 = arith.addf %59, %58 : vector<8x16x8xf32>
    %c0_70 = arith.constant 0 : index
    %c0_71 = arith.constant 0 : index
    %c0_72 = arith.constant 0 : index
    %61 = vector.load %arg8[%c0_70, %c0_71, %c0_72] : memref<8x16x8xf32, #tpu.memory_space<vmem>>, vector<8x16x8xf32>
    tpu.vector_store %arg8[%c0_70, %c0_71, %c0_72], %60 {strides = array<i32>} : memref<8x16x8xf32, #tpu.memory_space<vmem>>, vector<8x16x8xf32>,
    %c1_73 = arith.constant 1 : index
    %c9_74 = arith.constant 9 : index
    %c0_75 = arith.constant 0 : index
    %62 = vector.load %arg7[%c1_73, %c9_74, %c0_75] : memref<10x32x4xf32, #tpu.memory_space<vmem>>, vector<8x16x4xf32>
    %63 = vector.shape_cast %62 : vector<8x16x4xf32> to vector<128x4xf32>
    %c5 = arith.constant 5 : index
    %c0_76 = arith.constant 0 : index
    %c0_77 = arith.constant 0 : index
    %64 = vector.load %arg5[%c5, %c0_76, %c0_77] : memref<9x4x8xf32, #tpu.memory_space<vmem>>, vector<1x4x8xf32>
    %65 = vector.shape_cast %64 : vector<1x4x8xf32> to vector<4x8xf32>
    %cst_78 = arith.constant dense<0.000000e+00> : vector<128x8xf32>
    %66 = tpu.matmul %63, %65, %cst_78 {dimension_numbers = #tpu.dot_dimension_numbers<[1], [0], [0], [1], [0, 0, 1, 1], [], []>} : vector<128x4xf32>, vector<4x8xf32>, vector<128x8xf32> -> vector<128x8xf32>
    %67 = vector.shape_cast %66 : vector<128x8xf32> to vector<8x16x8xf32>
    %c0_79 = arith.constant 0 : index
    %c0_80 = arith.constant 0 : index
    %c0_81 = arith.constant 0 : index
    %68 = vector.load %arg8[%c0_79, %c0_80, %c0_81] : memref<8x16x8xf32, #tpu.memory_space<vmem>>, vector<8x16x8xf32>
    %69 = arith.addf %68, %67 : vector<8x16x8xf32>
    %c0_82 = arith.constant 0 : index
    %c0_83 = arith.constant 0 : index
    %c0_84 = arith.constant 0 : index
    %70 = vector.load %arg8[%c0_82, %c0_83, %c0_84] : memref<8x16x8xf32, #tpu.memory_space<vmem>>, vector<8x16x8xf32>
    tpu.vector_store %arg8[%c0_82, %c0_83, %c0_84], %69 {strides = array<i32>} : memref<8x16x8xf32, #tpu.memory_space<vmem>>, vector<8x16x8xf32>,
    %c2_85 = arith.constant 2 : index
    %c7_86 = arith.constant 7 : index
    %c0_87 = arith.constant 0 : index
    %71 = vector.load %arg7[%c2_85, %c7_86, %c0_87] : memref<10x32x4xf32, #tpu.memory_space<vmem>>, vector<8x16x4xf32>
    %72 = vector.shape_cast %71 : vector<8x16x4xf32> to vector<128x4xf32>
    %c6 = arith.constant 6 : index
    %c0_88 = arith.constant 0 : index
    %c0_89 = arith.constant 0 : index
    %73 = vector.load %arg5[%c6, %c0_88, %c0_89] : memref<9x4x8xf32, #tpu.memory_space<vmem>>, vector<1x4x8xf32>
    %74 = vector.shape_cast %73 : vector<1x4x8xf32> to vector<4x8xf32>
    %cst_90 = arith.constant dense<0.000000e+00> : vector<128x8xf32>
    %75 = tpu.matmul %72, %74, %cst_90 {dimension_numbers = #tpu.dot_dimension_numbers<[1], [0], [0], [1], [0, 0, 1, 1], [], []>} : vector<128x4xf32>, vector<4x8xf32>, vector<128x8xf32> -> vector<128x8xf32>
    %76 = vector.shape_cast %75 : vector<128x8xf32> to vector<8x16x8xf32>
    %c0_91 = arith.constant 0 : index
    %c0_92 = arith.constant 0 : index
    %c0_93 = arith.constant 0 : index
    %77 = vector.load %arg8[%c0_91, %c0_92, %c0_93] : memref<8x16x8xf32, #tpu.memory_space<vmem>>, vector<8x16x8xf32>
    %78 = arith.addf %77, %76 : vector<8x16x8xf32>
    %c0_94 = arith.constant 0 : index
    %c0_95 = arith.constant 0 : index
    %c0_96 = arith.constant 0 : index
    %79 = vector.load %arg8[%c0_94, %c0_95, %c0_96] : memref<8x16x8xf32, #tpu.memory_space<vmem>>, vector<8x16x8xf32>
    tpu.vector_store %arg8[%c0_94, %c0_95, %c0_96], %78 {strides = array<i32>} : memref<8x16x8xf32, #tpu.memory_space<vmem>>, vector<8x16x8xf32>,
    %c2_97 = arith.constant 2 : index
    %c8_98 = arith.constant 8 : index
    %c0_99 = arith.constant 0 : index
    %80 = vector.load %arg7[%c2_97, %c8_98, %c0_99] : memref<10x32x4xf32, #tpu.memory_space<vmem>>, vector<8x16x4xf32>
    %81 = vector.shape_cast %80 : vector<8x16x4xf32> to vector<128x4xf32>
    %c7_100 = arith.constant 7 : index
    %c0_101 = arith.constant 0 : index
    %c0_102 = arith.constant 0 : index
    %82 = vector.load %arg5[%c7_100, %c0_101, %c0_102] : memref<9x4x8xf32, #tpu.memory_space<vmem>>, vector<1x4x8xf32>
    %83 = vector.shape_cast %82 : vector<1x4x8xf32> to vector<4x8xf32>
    %cst_103 = arith.constant dense<0.000000e+00> : vector<128x8xf32>
    %84 = tpu.matmul %81, %83, %cst_103 {dimension_numbers = #tpu.dot_dimension_numbers<[1], [0], [0], [1], [0, 0, 1, 1], [], []>} : vector<128x4xf32>, vector<4x8xf32>, vector<128x8xf32> -> vector<128x8xf32>
    %85 = vector.shape_cast %84 : vector<128x8xf32> to vector<8x16x8xf32>
    %c0_104 = arith.constant 0 : index
    %c0_105 = arith.constant 0 : index
    %c0_106 = arith.constant 0 : index
    %86 = vector.load %arg8[%c0_104, %c0_105, %c0_106] : memref<8x16x8xf32, #tpu.memory_space<vmem>>, vector<8x16x8xf32>
    %87 = arith.addf %86, %85 : vector<8x16x8xf32>
    %c0_107 = arith.constant 0 : index
    %c0_108 = arith.constant 0 : index
    %c0_109 = arith.constant 0 : index
    %88 = vector.load %arg8[%c0_107, %c0_108, %c0_109] : memref<8x16x8xf32, #tpu.memory_space<vmem>>, vector<8x16x8xf32>
    tpu.vector_store %arg8[%c0_107, %c0_108, %c0_109], %87 {strides = array<i32>} : memref<8x16x8xf32, #tpu.memory_space<vmem>>, vector<8x16x8xf32>,
    %c2_110 = arith.constant 2 : index
    %c9_111 = arith.constant 9 : index
    %c0_112 = arith.constant 0 : index
    %89 = vector.load %arg7[%c2_110, %c9_111, %c0_112] : memref<10x32x4xf32, #tpu.memory_space<vmem>>, vector<8x16x4xf32>
    %90 = vector.shape_cast %89 : vector<8x16x4xf32> to vector<128x4xf32>
    %c8_113 = arith.constant 8 : index
    %c0_114 = arith.constant 0 : index
    %c0_115 = arith.constant 0 : index
    %91 = vector.load %arg5[%c8_113, %c0_114, %c0_115] : memref<9x4x8xf32, #tpu.memory_space<vmem>>, vector<1x4x8xf32>
    %92 = vector.shape_cast %91 : vector<1x4x8xf32> to vector<4x8xf32>
    %cst_116 = arith.constant dense<0.000000e+00> : vector<128x8xf32>
    %93 = tpu.matmul %90, %92, %cst_116 {dimension_numbers = #tpu.dot_dimension_numbers<[1], [0], [0], [1], [0, 0, 1, 1], [], []>} : vector<128x4xf32>, vector<4x8xf32>, vector<128x8xf32> -> vector<128x8xf32>
    %94 = vector.shape_cast %93 : vector<128x8xf32> to vector<8x16x8xf32>
    %c0_117 = arith.constant 0 : index
    %c0_118 = arith.constant 0 : index
    %c0_119 = arith.constant 0 : index
    %95 = vector.load %arg8[%c0_117, %c0_118, %c0_119] : memref<8x16x8xf32, #tpu.memory_space<vmem>>, vector<8x16x8xf32>
    %96 = arith.addf %95, %94 : vector<8x16x8xf32>
    %c0_120 = arith.constant 0 : index
    %c0_121 = arith.constant 0 : index
    %c0_122 = arith.constant 0 : index
    %97 = vector.load %arg8[%c0_120, %c0_121, %c0_122] : memref<8x16x8xf32, #tpu.memory_space<vmem>>, vector<8x16x8xf32>
    tpu.vector_store %arg8[%c0_120, %c0_121, %c0_122], %96 {strides = array<i32>} : memref<8x16x8xf32, #tpu.memory_space<vmem>>, vector<8x16x8xf32>,
    %c0_123 = arith.constant 0 : index
    %c0_124 = arith.constant 0 : index
    %c0_125 = arith.constant 0 : index
    %98 = vector.load %arg8[%c0_123, %c0_124, %c0_125] : memref<8x16x8xf32, #tpu.memory_space<vmem>>, vector<8x16x8xf32>
    %c0_126 = arith.constant 0 : index
    %c0_127 = arith.constant 0 : index
    %c0_128 = arith.constant 0 : index
    %c0_129 = arith.constant 0 : index
    %99 = vector.load %arg6[%c0_126, %c0_127, %c0_128, %c0_129] : memref<1x8x16x8xf32, #tpu.memory_space<vmem>>, vector<1x8x16x8xf32>
    %100 = vector.shape_cast %99 : vector<1x8x16x8xf32> to vector<8x16x8xf32>
    %101 = vector.shape_cast %98 : vector<8x16x8xf32> to vector<1x8x16x8xf32>
    tpu.vector_store %arg6[%c0_126, %c0_127, %c0_128, %c0_129], %101 {strides = array<i32>} : memref<1x8x16x8xf32, #tpu.memory_space<vmem>>, vector<1x8x16x8xf32>,
    return
  }
  func.func @transform_0(%arg0: i32, %arg1: i32) -> (i32, i32, i32, i32) {
    %c8_i32 = arith.constant 8 : i32
    %0 = arith.muli %arg1, %c8_i32 : i32
    %c1_i32 = arith.constant 1 : i32
    %1 = arith.subi %0, %c1_i32 : i32
    %c0_i32 = arith.constant 0 : i32
    %2 = arith.maxsi %1, %c0_i32 : i32
    %c0_i32_0 = arith.constant 0 : i32
    %c0_i32_1 = arith.constant 0 : i32
    %c0_i32_2 = arith.constant 0 : i32
    return %arg0, %2, %c0_i32_0, %c0_i32_1 : i32, i32, i32, i32
  }
  func.func @transform_1(%arg0: i32, %arg1: i32) -> (i32, i32, i32, i32) {
    %c0_i32 = arith.constant 0 : i32
    %c0_i32_0 = arith.constant 0 : i32
    %c0_i32_1 = arith.constant 0 : i32
    return %arg0, %arg1, %c0_i32, %c0_i32_0 : i32, i32, i32, i32
  }
  func.func @transform_2(%arg0: i32, %arg1: i32) -> (i32, i32, i32, i32) {
    %c1_i32 = arith.constant 1 : i32
    %0 = arith.addi %arg1, %c1_i32 : i32
    %c8_i32 = arith.constant 8 : i32
    %1 = arith.muli %0, %c8_i32 : i32
    %c15_i32 = arith.constant 15 : i32
    %2 = arith.minsi %1, %c15_i32 : i32
    %c0_i32 = arith.constant 0 : i32
    %c0_i32_0 = arith.constant 0 : i32
    %c0_i32_1 = arith.constant 0 : i32
    return %arg0, %2, %c0_i32, %c0_i32_0 : i32, i32, i32, i32
  }
  func.func @transform_3(%arg0: i32, %arg1: i32) -> (i32, i32, i32) {
    %c0_i32 = arith.constant 0 : i32
    %c0_i32_0 = arith.constant 0 : i32
    %c0_i32_1 = arith.constant 0 : i32
    %c0_i32_2 = arith.constant 0 : i32
    return %c0_i32, %c0_i32_0, %c0_i32_1 : i32, i32, i32
  }
  func.func @transform_4(%arg0: i32, %arg1: i32) -> (i32, i32, i32, i32) {
    %c0_i32 = arith.constant 0 : i32
    %c0_i32_0 = arith.constant 0 : i32
    %c0_i32_1 = arith.constant 0 : i32
    return %arg0, %arg1, %c0_i32, %c0_i32_0 : i32, i32, i32, i32
  }
}

</mosaic_0001>

<bundles_post_ra>
// kernel: tpu_custom_call.1
= control target key start
LH: loop header
LB: loop body
LE: loop exit
PB: predicated region body
PF: predicated region fallthrough
CT: control target
= control target key end

     0   :  { %s3662_s15 = smov 0   ;;  %s3664_s16 = smov 0   ;;  %s4406_s0 = inlined_call_operand.vmem [shape: f32[2,16,16,4], index: 0, kind: input, shape index: {}]   ;;  %s4407_s1 = inlined_call_operand.vmem [shape: f32[2,16,16,4], index: 1, kind: input, shape index: {}]   ;;  %s4408_s2 = inlined_call_operand.vmem [shape: f32[2,16,16,4], index: 2, kind: input, shape index: {}]   ;;  %s4409_s3 = inlined_call_operand.vmem [shape: f32[9,4,8], index: 3, kind: input, shape index: {}]   ;;  %s4410_s4 = inlined_call_operand.vmem [shape: f32[2,16,16,8], index: 4, kind: output, shape index: {}]  }
   0x1   :  { %s3666_s17 = smov 0   ;;  %s3668_s18 = smov 0  }
   0x2   :  { %s3670_s19 = smov 0  }
   0x3 LB: > { %s23_s20 = sadd.s32 1, %s3624_s17  ;;  %s26_s21 = sadd.s32 1, %s3628_s18  ;;  %s3632_s19 = sphi %s3670_s19, %s14_s19   ;;  %s3628_s18 = sphi %s3668_s18, %s4415_s18   ;;  %s3624_s17 = sphi %s3666_s17, %s4414_s17   ;;  %s3620_s16 = sphi %s3664_s16, %s4413_s16   ;;  %s3616_s15 = sphi %s3662_s15, %s4412_s15  }
   0x4   : > { %p24_p0 = scmp.ge.s32.totalorder %s23_s20, 2  ;;  %p2961_p1 = scmp.ge.s32.totalorder %s3632_s19, 1 }
   0x5   : > { %p248_p2 = scmp.lt.s32.totalorder %s3632_s19, 5 }
   0x6   : > { %s4417_s20 = smov (%p24_p0, %s23_s20), 0  ;;  %s4419_s21 = smov (!%p24_p0, %s26_s21), %s3628_s18 }
   0x7   : > { %p249_p3 = pnand %p2961_p1, %p248_p2  ;;  %p28_p4 = scmp.ge.s32.totalorder %s4419_s21, 2 }
   0x8   : > { %s3697_s22 = sshll.u32 (!%p249_p3), %s3616_s15, 3  ;;  %p314_p5 = scmp.lt.s32.totalorder (!%p249_p3), %s3620_s16, 1 }
   0x9   : > { %s4421_s21 = smov (%p28_p4, %s4419_s21), 0  ;;  %252 = sbr.rel (%p249_p3) target bundleno = 421 (0x1a5), region = 36 }
   0xa   : > { %s2963_s23 = sadd.s32 (!%p249_p3), 4294967295, %s3697_s22  ;;  %p330_p6 = scmp.lt.s32.totalorder (!%p249_p3), %s3697_s22, 15 }
   0xb   : > { %p312_p7 = scmp.gt.s32.totalorder (!%p249_p3), %s2963_s23, 0  ;;  %p2964_p8 = scmp.lt.s32.totalorder (!%p249_p3), %s2963_s23, 15 }
   0xc   : > { %s3161_s25 = sadd.s32 (!%p249_p3), 8, %s3697_s22  ;;  %p2987_p10 = scmp.le.s32.totalorder (!%p249_p3), %s3616_s15, 0 }
   0xd   : > { %p3729_p9 = scmp.lt.s32.totalorder (!%p249_p3), %s3161_s25, 15 }
   0xe   : > { %vm366_vm0 = vcmask 31744   ;;  %v3634_v0 = vmov 0.0   ;;  %s4423_s16 = smov (!%p314_p5, %s3620_s16), 1  ;;  %s4425_s23 = smov (!%p312_p7, %s2963_s23), 0 }
   0xf   : > { %367 = vst.msk [vmem:[#allocation2] sm:$0xff] %vm366_vm0, %v3634_v0  ;;  %368 = vst.msk [vmem:[#allocation2 + $0x20] sm:$0xff] %vm366_vm0, %v3634_v0  ;;  %s3725_s24 = sshll.u32 %s4423_s16, 5  ;;  %s4427_s23 = smov (!%p2964_p8, %s4425_s23), 15 }
  0x10   : > { %369 = vst.msk [vmem:[#allocation2 + $0x40] sm:$0xff] %vm366_vm0, %v3634_v0  ;;  %370 = vst.msk [vmem:[#allocation2 + $0x60] sm:$0xff] %vm366_vm0, %v3634_v0  ;;  %s4429_s22 = smov (!%p330_p6, %s3697_s22), 15  ;;  %s2969_s26 = sshll.u32 %s4427_s23, 1 }
  0x11   : > { %371 = vst.msk [vmem:[#allocation2 + $0x80] sm:$0xff] %vm366_vm0, %v3634_v0  ;;  %372 = vst.msk [vmem:[#allocation2 + $0xa0] sm:$0xff] %vm366_vm0, %v3634_v0  ;;  %s320_s28 = sadd.s32 %s3725_s24, %s2969_s26  ;;  %s2973_s29 = sshll.u32 %s4429_s22, 1 }
  0x12   : > { %373 = vst.msk [vmem:[#allocation2 + $0xc0] sm:$0xff] %vm366_vm0, %v3634_v0  ;;  %374 = vst.msk [vmem:[#allocation2 + $0xe0] sm:$0xff] %vm366_vm0, %v3634_v0  ;;  %s2971_s30 = sshll.u32 %s320_s28, 3  ;;  %s334_s5 = sadd.s32 %s2973_s29, %s3725_s24 }
  0x13   : > { %375 = vst.msk [vmem:[#allocation2 + $0x100] sm:$0xff] %vm366_vm0, %v3634_v0  ;;  %376 = vst.msk [vmem:[#allocation2 + $0x120] sm:$0xff] %vm366_vm0, %v3634_v0  ;;  %s3738_s8 = scalar_lea.vmem %s4406_s0, %s2971_s30  ;;  %s2975_s9 = sshll.u32 %s334_s5, 3 }
  0x14   : > { %377 = vst.msk [vmem:[#allocation2 + $0x18] sm:$0xff] %vm366_vm0, %v3634_v0  ;;  %378 = vst.msk [vmem:[#allocation2 + $0x38] sm:$0xff] %vm366_vm0, %v3634_v0  ;;  %s3743_s12 = scalar_lea.vmem %s4407_s1, %s2975_s9  ;;  %s3748_s16 = scalar_lea.vmem %s4410_s4, %s2975_s9 }
  0x15   : > { %379 = vst.msk [vmem:[#allocation2 + $0x58] sm:$0xff] %vm366_vm0, %v3634_v0  ;;  %380 = vst.msk [vmem:[#allocation2 + $0x78] sm:$0xff] %vm366_vm0, %v3634_v0  ;;  %s4431_s25 = smov (!%p3729_p9, %s3161_s25), 15  ;;  %v387_v1 = vld [vmem:[%s3743_s12] sm:$0xff]  ;;  %v388_v2 = vld [vmem:[%s3743_s12 + $0x8] sm:$0xff] }
  0x16   : > { %381 = vst.msk [vmem:[#allocation2 + $0x98] sm:$0xff] %vm366_vm0, %v3634_v0  ;;  %382 = vst.msk [vmem:[#allocation2 + $0xb8] sm:$0xff] %vm366_vm0, %v3634_v0  ;;  %v389_v3 = vld [vmem:[%s3743_s12 + $0x10] sm:$0xff]  ;;  %v390_v4 = vld [vmem:[%s3743_s12 + $0x18] sm:$0xff]  ;;  %s4433_s25 = smov (!%p3729_p9, %s4431_s25), 15 }
  0x17   : > { %383 = vst.msk [vmem:[#allocation2 + $0xd8] sm:$0xff] %vm366_vm0, %v3634_v0  ;;  %384 = vst.msk [vmem:[#allocation2 + $0xf8] sm:$0xff] %vm366_vm0, %v3634_v0  ;;  %v391_v5 = vld [vmem:[%s3743_s12 + $0x20] sm:$0xff]  ;;  %v392_v6 = vld [vmem:[%s3743_s12 + $0x28] sm:$0xff]  ;;  %s2980_s22 = sshll.u32 %s4433_s25, 1 }
  0x18   : > { %385 = vst.msk [vmem:[#allocation2 + $0x118] sm:$0xff] %vm366_vm0, %v3634_v0  ;;  %386 = vst.msk [vmem:[#allocation2 + $0x138] sm:$0xff] %vm366_vm0, %v3634_v0  ;;  %v393_v7 = vld [vmem:[%s3743_s12 + $0x30] sm:$0xff]  ;;  %v394_v8 = vld [vmem:[%s3743_s12 + $0x38] sm:$0xff]  ;;  %s348_s23 = sadd.s32 %s2980_s22, %s3725_s24 }
  0x19   : > { %404 = vst.msk [vmem:[#allocation2 + $0x28] sm:$0xff] %vm366_vm0, %v387_v1  ;;  %405 = vst.msk [vmem:[#allocation2 + $0x30] sm:$0xff] %vm366_vm0, %v388_v2  ;;  %v395_v9 = vld [vmem:[%s3743_s12 + $0x40] sm:$0xff]  ;;  %v396_v10 = vld [vmem:[%s3743_s12 + $0x48] sm:$0xff]  ;;  %s2982_s26 = sshll.u32 %s348_s23, 3 }
  0x1a   : > { %406 = vst.msk [vmem:[#allocation2 + $0x48] sm:$0xff] %vm366_vm0, %v389_v3  ;;  %407 = vst.msk [vmem:[#allocation2 + $0x50] sm:$0xff] %vm366_vm0, %v390_v4  ;;  %v397_v11 = vld [vmem:[%s3743_s12 + $0x50] sm:$0xff]  ;;  %v398_v12 = vld [vmem:[%s3743_s12 + $0x58] sm:$0xff]  ;;  %s350_s28 = scalar_lea.vmem %s4408_s2, %s2982_s26 }
  0x1b   : > { %408 = vst.msk [vmem:[#allocation2 + $0x68] sm:$0xff] %vm366_vm0, %v391_v5  ;;  %409 = vst.msk [vmem:[#allocation2 + $0x70] sm:$0xff] %vm366_vm0, %v392_v6  ;;  %v399_v13 = vld [vmem:[%s3743_s12 + $0x60] sm:$0xff]  ;;  %v400_v14 = vld [vmem:[%s3743_s12 + $0x68] sm:$0xff] }
  0x1c   : > { %410 = vst.msk [vmem:[#allocation2 + $0x88] sm:$0xff] %vm366_vm0, %v393_v7  ;;  %411 = vst.msk [vmem:[#allocation2 + $0x90] sm:$0xff] %vm366_vm0, %v394_v8  ;;  %v401_v15 = vld [vmem:[%s3743_s12 + $0x70] sm:$0xff]  ;;  %v402_v16 = vld [vmem:[%s3743_s12 + $0x78] sm:$0xff]  ;;  %423 = sbr.rel (%p2987_p10) target bundleno = 35 (0x23), region = 40 }
  0x1d   : > { %412 = vst.msk [vmem:[#allocation2 + $0xa8] sm:$0xff] %vm366_vm0, %v395_v9  ;;  %413 = vst.msk [vmem:[#allocation2 + $0xb0] sm:$0xff] %vm366_vm0, %v396_v10 }
  0x1e   : > { %414 = vst.msk [vmem:[#allocation2 + $0xc8] sm:$0xff] %vm366_vm0, %v397_v11  ;;  %415 = vst.msk [vmem:[#allocation2 + $0xd0] sm:$0xff] %vm366_vm0, %v398_v12 }
  0x1f   : > { %416 = vst.msk [vmem:[#allocation2 + $0xe8] sm:$0xff] %vm366_vm0, %v399_v13  ;;  %417 = vst.msk [vmem:[#allocation2 + $0xf0] sm:$0xff] %vm366_vm0, %v400_v14 }
  0x20   : > { %418 = vst.msk [vmem:[#allocation2 + $0x108] sm:$0xff] %vm366_vm0, %v401_v15  ;;  %419 = vst.msk [vmem:[#allocation2 + $0x110] sm:$0xff] %vm366_vm0, %v402_v16 }
  0x21   : > { %v424_v17 = vld [vmem:[%s3738_s8] sm:$0xff]  ;;  %v425_v18 = vld [vmem:[%s3738_s8 + $0x8] sm:$0xff] }
  0x22   : > { %426 = vst.msk [vmem:[#allocation2 + $0x8] sm:$0xff] %vm366_vm0, %v424_v17  ;;  %427 = vst.msk [vmem:[#allocation2 + $0x10] sm:$0xff] %vm366_vm0, %v425_v18 }
  0x23 PF: > { %p2988_p11 = scmp.ne.s32.totalorder %s3616_s15, 0 }
  0x25   : > { %431 = sbr.rel (%p2988_p11) target bundleno = 44 (0x2c), region = 44 }
  0x2a   : > { %v3635_v19 = vmov 0.0  }
  0x2b   : > { %432 = vst.msk [vmem:[#allocation2 + $0x8] sm:$0xff] %vm366_vm0, %v3635_v19  ;;  %433 = vst.msk [vmem:[#allocation2 + $0x10] sm:$0xff] %vm366_vm0, %v3635_v19 }
  0x2c PF: > { %p2989_p12 = scmp.ge.s32.totalorder %s3616_s15, 1 }
  0x2e   : > { %437 = sbr.rel (%p2989_p12) target bundleno = 53 (0x35), region = 48 }
  0x33   : > { %v438_v20 = vld [vmem:[%s350_s28] sm:$0xff]  ;;  %v439_v21 = vld [vmem:[%s350_s28 + $0x8] sm:$0xff] }
  0x34   : > { %441 = vst.msk [vmem:[#allocation2 + $0x128] sm:$0xff] %vm366_vm0, %v438_v20  ;;  %442 = vst.msk [vmem:[#allocation2 + $0x130] sm:$0xff] %vm366_vm0, %v439_v21 }
  0x35 PF: > { %p2990_p13 = scmp.ne.s32.totalorder %s3616_s15, 1 }
  0x37   : > { %446 = sbr.rel (%p2990_p13) target bundleno = 62 (0x3e), region = 52 }
  0x3c   : > { %v3636_v22 = vmov 0.0  }
  0x3d   : > { %448 = vst.msk [vmem:[#allocation2 + $0x128] sm:$0xff] %vm366_vm0, %v3636_v22  ;;  %449 = vst.msk [vmem:[#allocation2 + $0x130] sm:$0xff] %vm366_vm0, %v3636_v22 }
  0x3e PF: > { %v466_v23 = vld [vmem:[%s4409_s3] sm:$0xf]  ;;  %vm515_vm1 = vcmask 1043456   ;;  %v3807_v24 = vld [vmem:[#allocation2 + $0x87] sm:$0xff]  ;;  %v3809_v25 = vld [vmem:[#allocation2 + $0x8f] sm:$0xff]  ;;  %vm664_vm2 = vcmask 64512  }
  0x3f   : > { %3549 = vmatprep.subr.msk.mxu1 %vm515_vm1, %v466_v23  ;;  %3329 = vmatprep.mubr.msk.f32.mxu1 %vm366_vm0, %v3807_v24  ;;  %v3008_v26 = vld [vmem:[%s4409_s3 + $0x4] sm:$0xf]  ;;  %v451_v29 = vld [vmem:[#allocation2 + $0xf] sm:$0xff]  ;;  %v3026_v30 = vld [vmem:[%s4409_s3 + $0x8] sm:$0xf] }
  0x40   : > { %v3817_v27 = vld [vmem:[#allocation2 + $0xa7] sm:$0xff]  ;;  %3550 = vmatpush3.msk.msra.mxu1 %vm515_vm1, %v466_v23  ;;  %3315 = vmatprep.subr.msk.mxu0 %vm515_vm1, %v466_v23  ;;  %v3830_v31 = vld [vmem:[#allocation2 + $0xaf] sm:$0xff]  ;;  %v3912_v53 = vld [vmem:[%s4409_s3 + $0x18] sm:$0xf] }
  0x41   : > { %v450_v28 = vld [vmem:[#allocation2 + $0x7] sm:$0xff]  ;;  %3330 = vmatmul.mubr.msk.f32.vlgmr.msra.gmra.mxu1 %vm366_vm0, %v3809_v25  ;;  %3341 = vmatprep.subr.msk.mxu1 %vm515_vm1, %v3008_v26  ;;  %v3847_v35 = vld [vmem:[#allocation2 + $0x2f] sm:$0xff]  ;;  %v3116_v14 = vld [vmem:[%s4409_s3 + $0x1c] sm:$0xf] }
  0x42   : > { %3342 = vmatpush3.msk.msra.mxu1 %vm515_vm1, %v3008_v26  ;;  %3332 = vmatprep.mubr.msk.f32.mxu1 %vm366_vm0, %v3817_v27  ;;  %v3832_v32 = vld [vmem:[#allocation2 + $0x27] sm:$0xff]  ;;  %v3851_v36 = vld [vmem:[#allocation2 + $0xcf] sm:$0xff]  ;;  %v3134_v15 = vld [vmem:[%s4409_s3 + $0x20] sm:$0xf] }
  0x43   : > { %3316 = vmatpush3.msk.msra.mxu0 %vm515_vm1, %v466_v23  ;;  %3317 = vmatprep.mubr.msk.f32.mxu0 %vm366_vm0, %v450_v28  ;;  %v3836_v33 = vld [vmem:[#allocation2 + $0xc7] sm:$0xff]  ;;  %v3062_v39 = vld [vmem:[%s4409_s3 + $0x10] sm:$0xf]  ;;  %v3893_v48 = vld [vmem:[%s4409_s3 + $0x14] sm:$0xf] }
  0x44   : > { %3318 = vmatmul.mubr.msk.f32.vlgmr.msra.gmra.mxu0 %vm366_vm0, %v451_v29  ;;  %3367 = vmatprep.subr.msk.mxu0 %vm515_vm1, %v3026_v30  ;;  %v3044_v34 = vld [vmem:[%s4409_s3 + $0xc] sm:$0xf]  ;;  %v682_v45 = vld [vmem:[#allocation2 + $0x10] sm:$0xff] }
  0x45   : > { %3333 = vmatmul.mubr.msk.f32.gmra.mxu1 %vm366_vm0, %v3830_v31  ;;  %3320 = vmatprep.mubr.msk.f32.mxu0 %vm366_vm0, %v3832_v32  ;;  %v3854_v37 = vld [vmem:[#allocation2 + $0x47] sm:$0xff]  ;;  %v3869_v40 = vld [vmem:[#allocation2 + $0x4f] sm:$0xff] }
  0x46   : > { %3335 = vmatprep.mubr.msk.f32.mxu1 %vm366_vm0, %v3836_v33  ;;  %3368 = vmatpush3.msk.msra.mxu0 %vm515_vm1, %v3026_v30  ;;  %v3856_v38 = vld [vmem:[#allocation2 + $0xe7] sm:$0xff]  ;;  %v3873_v41 = vld [vmem:[#allocation2 + $0xef] sm:$0xff] }
  0x47   : > { %3393 = vmatprep.subr.msk.mxu1 %vm515_vm1, %v3044_v34  ;;  %3419 = vmatprep.subr.msk.mxu0 %vm515_vm1, %v3062_v39  ;;  %v3875_v42 = vld [vmem:[#allocation2 + $0x67] sm:$0xff]  ;;  %v3883_v44 = vld [vmem:[#allocation2 + $0x6f] sm:$0xff] }
  0x48   : > { %3321 = vmatmul.mubr.msk.f32.gmra.mxu0 %vm366_vm0, %v3847_v35  ;;  %v681_v43 = vld [vmem:[#allocation2 + $0x8] sm:$0xff]  ;;  %v944_v49 = vld [vmem:[#allocation2 + $0x11] sm:$0xff] }
  0x49   : > { %3336 = vmatmul.mubr.msk.f32.gmra.mxu1 %vm366_vm0, %v3851_v36  ;;  %3323 = vmatprep.mubr.msk.f32.mxu0 %vm366_vm0, %v3854_v37  ;;  %v943_v46 = vld [vmem:[#allocation2 + $0x9] sm:$0xff]  ;;  %v3917_v54 = vld [vmem:[#allocation2 + $0x31] sm:$0xff] }
  0x4a   : > { %3338 = vmatprep.mubr.msk.f32.mxu1 %vm366_vm0, %v3856_v38  ;;  %v3886_v47 = vld [vmem:[#allocation2 + $0x28] sm:$0xff]  ;;  %v3900_v50 = vld [vmem:[#allocation2 + $0x30] sm:$0xff] }
  0x4b   : > { %v3902_v51 = vld [vmem:[#allocation2 + $0x48] sm:$0xff]  ;;  %v3921_v55 = vld [vmem:[#allocation2 + $0x50] sm:$0xff] }
  0x4c   : > { %3324 = vmatmul.mubr.msk.f32.gmra.mxu0 %vm366_vm0, %v3869_v40  ;;  %v3904_v52 = vld [vmem:[#allocation2 + $0x29] sm:$0xff]  ;;  %v3937_v58 = vld [vmem:[#allocation2 + $0x51] sm:$0xff] }
  0x4d   : > { %3339 = vmatmul.mubr.msk.f32.gmra.mxu1 %vm366_vm0, %v3873_v41  ;;  %3326 = vmatprep.mubr.msk.f32.mxu0 %vm366_vm0, %v3875_v42  ;;  %v3925_v56 = vld [vmem:[#allocation2 + $0x49] sm:$0xff]  ;;  %v3953_v62 = vld [vmem:[#allocation2 + $0x71] sm:$0xff] }
  0x4e   : > { %3343 = vmatprep.mubr.msk.f32.mxu1 %vm366_vm0, %v681_v43  ;;  %v3927_v57 = vld [vmem:[#allocation2 + $0x68] sm:$0xff]  ;;  %v3941_v59 = vld [vmem:[#allocation2 + $0x70] sm:$0xff] }
  0x4f   : > { %v3943_v60 = vld [vmem:[#allocation2 + $0x69] sm:$0xff]  ;;  %v3969_v2 = vld [vmem:[#allocation2 + $0x91] sm:$0xff] }
  0x50   : > { %3327 = vmatmul.mubr.msk.f32.gmra.mxu0 %vm366_vm0, %v3883_v44  ;;  %v3945_v61 = vld [vmem:[#allocation2 + $0x88] sm:$0xff]  ;;  %v3957_v63 = vld [vmem:[#allocation2 + $0x90] sm:$0xff] }
  0x51   : > { %3344 = vmatmul.mubr.msk.f32.vlgmr.msra.gmra.mxu1 %vm366_vm0, %v682_v45  ;;  %3369 = vmatprep.mubr.msk.f32.mxu0 %vm366_vm0, %v943_v46  ;;  %v3959_v0 = vld [vmem:[#allocation2 + $0x89] sm:$0xff]  ;;  %v3985_v6 = vld [vmem:[#allocation2 + $0xb1] sm:$0xff] }
  0x52   : > { %3394 = vmatpush3.msk.msra.mxu1 %vm515_vm1, %v3044_v34  ;;  %3346 = vmatprep.mubr.msk.f32.mxu1 %vm366_vm0, %v3886_v47  ;;  %v3961_v1 = vld [vmem:[#allocation2 + $0xa8] sm:$0xff]  ;;  %v3973_v3 = vld [vmem:[#allocation2 + $0xb0] sm:$0xff] }
  0x53   : > { %3445 = vmatprep.subr.msk.mxu1 %vm515_vm1, %v3893_v48  ;;  %v3975_v4 = vld [vmem:[#allocation2 + $0xa9] sm:$0xff]  ;;  %v4001_v10 = vld [vmem:[#allocation2 + $0xd1] sm:$0xff] }
  0x54   : > { %3370 = vmatmul.mubr.msk.f32.vlgmr.msra.gmra.mxu0 %vm366_vm0, %v944_v49  ;;  %v3977_v5 = vld [vmem:[#allocation2 + $0xc8] sm:$0xff]  ;;  %v3989_v7 = vld [vmem:[#allocation2 + $0xd0] sm:$0xff] }
  0x55   : > { %3347 = vmatmul.mubr.msk.f32.gmra.mxu1 %vm366_vm0, %v3900_v50  ;;  %3420 = vmatpush3.msk.msra.mxu0 %vm515_vm1, %v3062_v39  ;;  %v3991_v8 = vld [vmem:[#allocation2 + $0xc9] sm:$0xff]  ;;  %v4015_v13 = vld [vmem:[#allocation2 + $0xf1] sm:$0xff] }
  0x56   : > { %3349 = vmatprep.mubr.msk.f32.mxu1 %vm366_vm0, %v3902_v51  ;;  %3372 = vmatprep.mubr.msk.f32.mxu0 %vm366_vm0, %v3904_v52  ;;  %v3993_v9 = vld [vmem:[#allocation2 + $0xe8] sm:$0xff]  ;;  %v4005_v11 = vld [vmem:[#allocation2 + $0xf0] sm:$0xff] }
  0x57   : > { %3471 = vmatprep.subr.msk.mxu0 %vm515_vm1, %v3912_v53  ;;  %v4007_v12 = vld [vmem:[#allocation2 + $0xe9] sm:$0xff]  ;;  %v1744_v21 = vld [vmem:[#allocation2 + $0x111] sm:$0xff] }
  0x58   : > { %3373 = vmatmul.mubr.msk.f32.gmra.mxu0 %vm366_vm0, %v3917_v54  ;;  %v1219_v16 = vld [vmem:[#allocation2 + $0x107] sm:$0xff]  ;;  %v1220_v17 = vld [vmem:[#allocation2 + $0x10f] sm:$0xff] }
  0x59   : > { %3350 = vmatmul.mubr.msk.f32.gmra.mxu1 %vm366_vm0, %v3921_v55  ;;  %3375 = vmatprep.mubr.msk.f32.mxu0 %vm366_vm0, %v3925_v56  ;;  %v4086_v18 = vld [vmem:[#allocation2 + $0x108] sm:$0xff]  ;;  %v4093_v19 = vld [vmem:[#allocation2 + $0x110] sm:$0xff] }
  0x5a   : > { %3352 = vmatprep.mubr.msk.f32.mxu1 %vm366_vm0, %v3927_v57  ;;  %v1743_v20 = vld [vmem:[#allocation2 + $0x109] sm:$0xff] }
  0x5b   : > { %v2006_v22 = vld [vmem:[#allocation2 + $0x127] sm:$0xff]  ;;  %v2007_v23 = vld [vmem:[#allocation2 + $0x12f] sm:$0xff] }
  0x5c   : > { %3376 = vmatmul.mubr.msk.f32.gmra.mxu0 %vm366_vm0, %v3937_v58  ;;  %v2530_v26 = vld [vmem:[#allocation2 + $0x129] sm:$0xff] }
  0x5d   : > { %3353 = vmatmul.mubr.msk.f32.gmra.mxu1 %vm366_vm0, %v3941_v59  ;;  %3378 = vmatprep.mubr.msk.f32.mxu0 %vm366_vm0, %v3943_v60 }
  0x5e   : > { %3355 = vmatprep.mubr.msk.f32.mxu1 %vm366_vm0, %v3945_v61 }
  0x60   : > { %3379 = vmatmul.mubr.msk.f32.gmra.mxu0 %vm366_vm0, %v3953_v62 }
  0x61   : > { %3356 = vmatmul.mubr.msk.f32.gmra.mxu1 %vm366_vm0, %v3957_v63  ;;  %3381 = vmatprep.mubr.msk.f32.mxu0 %vm366_vm0, %v3959_v0 }
  0x62   : > { %3358 = vmatprep.mubr.msk.f32.mxu1 %vm366_vm0, %v3961_v1 }
  0x64   : > { %3382 = vmatmul.mubr.msk.f32.gmra.mxu0 %vm366_vm0, %v3969_v2 }
  0x65   : > { %3359 = vmatmul.mubr.msk.f32.gmra.mxu1 %vm366_vm0, %v3973_v3  ;;  %3384 = vmatprep.mubr.msk.f32.mxu0 %vm366_vm0, %v3975_v4 }
  0x66   : > { %3361 = vmatprep.mubr.msk.f32.mxu1 %vm366_vm0, %v3977_v5 }
  0x68   : > { %3385 = vmatmul.mubr.msk.f32.gmra.mxu0 %vm366_vm0, %v3985_v6 }
  0x69   : > { %3362 = vmatmul.mubr.msk.f32.gmra.mxu1 %vm366_vm0, %v3989_v7  ;;  %3387 = vmatprep.mubr.msk.f32.mxu0 %vm366_vm0, %v3991_v8 }
  0x6a   : > { %3364 = vmatprep.mubr.msk.f32.mxu1 %vm366_vm0, %v3993_v9 }
  0x6c   : > { %3388 = vmatmul.mubr.msk.f32.gmra.mxu0 %vm366_vm0, %v4001_v10 }
  0x6d   : > { %3365 = vmatmul.mubr.msk.f32.gmra.mxu1 %vm366_vm0, %v4005_v11  ;;  %3390 = vmatprep.mubr.msk.f32.mxu0 %vm366_vm0, %v4007_v12 }
  0x6e   : > { %3395 = vmatprep.mubr.msk.f32.mxu1 %vm366_vm0, %v3832_v32 }
  0x70   : > { %3391 = vmatmul.mubr.msk.f32.gmra.mxu0 %vm366_vm0, %v4015_v13 }
  0x71   : > { %3396 = vmatmul.mubr.msk.f32.vlgmr.msra.gmra.mxu1 %vm366_vm0, %v3847_v35  ;;  %3421 = vmatprep.mubr.msk.f32.mxu0 %vm366_vm0, %v3886_v47 }
  0x72   : > { %3446 = vmatpush3.msk.msra.mxu1 %vm515_vm1, %v3893_v48  ;;  %3398 = vmatprep.mubr.msk.f32.mxu1 %vm366_vm0, %v3854_v37 }
  0x73   : > { %3497 = vmatprep.subr.msk.mxu1 %vm515_vm1, %v3116_v14 }
  0x74   : > { %3422 = vmatmul.mubr.msk.f32.vlgmr.msra.gmra.mxu0 %vm366_vm0, %v3900_v50 }
  0x75   : > { %3399 = vmatmul.mubr.msk.f32.gmra.mxu1 %vm366_vm0, %v3869_v40  ;;  %3472 = vmatpush3.msk.msra.mxu0 %vm515_vm1, %v3912_v53 }
  0x76   : > { %3401 = vmatprep.mubr.msk.f32.mxu1 %vm366_vm0, %v3875_v42  ;;  %3424 = vmatprep.mubr.msk.f32.mxu0 %vm366_vm0, %v3902_v51 }
  0x77   : > { %3523 = vmatprep.subr.msk.mxu0 %vm515_vm1, %v3134_v15 }
  0x78   : > { %3425 = vmatmul.mubr.msk.f32.gmra.mxu0 %vm366_vm0, %v3921_v55 }
  0x79   : > { %3402 = vmatmul.mubr.msk.f32.gmra.mxu1 %vm366_vm0, %v3883_v44  ;;  %3427 = vmatprep.mubr.msk.f32.mxu0 %vm366_vm0, %v3927_v57 }
  0x7a   : > { %3404 = vmatprep.mubr.msk.f32.mxu1 %vm366_vm0, %v3807_v24 }
  0x7c   : > { %3428 = vmatmul.mubr.msk.f32.gmra.mxu0 %vm366_vm0, %v3941_v59 }
  0x7d   : > { %3405 = vmatmul.mubr.msk.f32.gmra.mxu1 %vm366_vm0, %v3809_v25  ;;  %3430 = vmatprep.mubr.msk.f32.mxu0 %vm366_vm0, %v3945_v61 }
  0x7e   : > { %3407 = vmatprep.mubr.msk.f32.mxu1 %vm366_vm0, %v3817_v27 }
  0x80   : > { %3431 = vmatmul.mubr.msk.f32.gmra.mxu0 %vm366_vm0, %v3957_v63 }
  0x81   : > { %3408 = vmatmul.mubr.msk.f32.gmra.mxu1 %vm366_vm0, %v3830_v31  ;;  %3433 = vmatprep.mubr.msk.f32.mxu0 %vm366_vm0, %v3961_v1 }
  0x82   : > { %3410 = vmatprep.mubr.msk.f32.mxu1 %vm366_vm0, %v3836_v33 }
  0x84   : > { %3434 = vmatmul.mubr.msk.f32.gmra.mxu0 %vm366_vm0, %v3973_v3 }
  0x85   : > { %3411 = vmatmul.mubr.msk.f32.gmra.mxu1 %vm366_vm0, %v3851_v36  ;;  %3436 = vmatprep.mubr.msk.f32.mxu0 %vm366_vm0, %v3977_v5 }
  0x86   : > { %3413 = vmatprep.mubr.msk.f32.mxu1 %vm366_vm0, %v3856_v38 }
  0x88   : > { %3437 = vmatmul.mubr.msk.f32.gmra.mxu0 %vm366_vm0, %v3989_v7 }
  0x89   : > { %3414 = vmatmul.mubr.msk.f32.gmra.mxu1 %vm366_vm0, %v3873_v41  ;;  %3439 = vmatprep.mubr.msk.f32.mxu0 %vm366_vm0, %v3993_v9 }
  0x8a   : > { %3416 = vmatprep.mubr.msk.f32.mxu1 %vm366_vm0, %v1219_v16 }
  0x8c   : > { %3440 = vmatmul.mubr.msk.f32.gmra.mxu0 %vm366_vm0, %v4005_v11 }
  0x8d   : > { %3417 = vmatmul.mubr.msk.f32.gmra.mxu1 %vm366_vm0, %v1220_v17  ;;  %3442 = vmatprep.mubr.msk.f32.mxu0 %vm366_vm0, %v4086_v18 }
  0x8e   : > { %3447 = vmatprep.mubr.msk.f32.mxu1 %vm366_vm0, %v3904_v52 }
  0x90   : > { %3443 = vmatmul.mubr.msk.f32.gmra.mxu0 %vm366_vm0, %v4093_v19 }
  0x91   : > { %3448 = vmatmul.mubr.msk.f32.vlgmr.msra.gmra.mxu1 %vm366_vm0, %v3917_v54  ;;  %3473 = vmatprep.mubr.msk.f32.mxu0 %vm366_vm0, %v3854_v37 }
  0x92   : > { %3498 = vmatpush3.msk.msra.mxu1 %vm515_vm1, %v3116_v14  ;;  %3450 = vmatprep.mubr.msk.f32.mxu1 %vm366_vm0, %v3925_v56 }
  0x94   : > { %3474 = vmatmul.mubr.msk.f32.vlgmr.msra.gmra.mxu0 %vm366_vm0, %v3869_v40 }
  0x95   : > { %3451 = vmatmul.mubr.msk.f32.gmra.mxu1 %vm366_vm0, %v3937_v58  ;;  %3524 = vmatpush3.msk.msra.mxu0 %vm515_vm1, %v3134_v15 }
  0x96   : > { %3453 = vmatprep.mubr.msk.f32.mxu1 %vm366_vm0, %v3943_v60  ;;  %3476 = vmatprep.mubr.msk.f32.mxu0 %vm366_vm0, %v3875_v42 }
  0x98   : > { %3477 = vmatmul.mubr.msk.f32.gmra.mxu0 %vm366_vm0, %v3883_v44 }
  0x99   : > { %3454 = vmatmul.mubr.msk.f32.gmra.mxu1 %vm366_vm0, %v3953_v62  ;;  %3479 = vmatprep.mubr.msk.f32.mxu0 %vm366_vm0, %v3807_v24  ;;  %v2268_v24 = vld [vmem:[#allocation2 + $0x128] sm:$0xff] }
  0x9a   : > { %3456 = vmatprep.mubr.msk.f32.mxu1 %vm366_vm0, %v3959_v0 }
  0x9c   : > { %3480 = vmatmul.mubr.msk.f32.gmra.mxu0 %vm366_vm0, %v3809_v25  ;;  %v2269_v25 = vld [vmem:[#allocation2 + $0x130] sm:$0xff] }
  0x9d   : > { %3457 = vmatmul.mubr.msk.f32.gmra.mxu1 %vm366_vm0, %v3969_v2  ;;  %3482 = vmatprep.mubr.msk.f32.mxu0 %vm366_vm0, %v3817_v27  ;;  %v2531_v27 = vld [vmem:[#allocation2 + $0x131] sm:$0xff] }
  0x9e   : > { %3459 = vmatprep.mubr.msk.f32.mxu1 %vm366_vm0, %v3975_v4 }
  0xa0   : > { %3483 = vmatmul.mubr.msk.f32.gmra.mxu0 %vm366_vm0, %v3830_v31 }
  0xa1   : > { %3460 = vmatmul.mubr.msk.f32.gmra.mxu1 %vm366_vm0, %v3985_v6  ;;  %3485 = vmatprep.mubr.msk.f32.mxu0 %vm366_vm0, %v3836_v33 }
  0xa2   : > { %3462 = vmatprep.mubr.msk.f32.mxu1 %vm366_vm0, %v3991_v8 }
  0xa4   : > { %3486 = vmatmul.mubr.msk.f32.gmra.mxu0 %vm366_vm0, %v3851_v36 }
  0xa5   : > { %3463 = vmatmul.mubr.msk.f32.gmra.mxu1 %vm366_vm0, %v4001_v10  ;;  %3488 = vmatprep.mubr.msk.f32.mxu0 %vm366_vm0, %v3856_v38 }
  0xa6   : > { %3465 = vmatprep.mubr.msk.f32.mxu1 %vm366_vm0, %v4007_v12 }
  0xa8   : > { %3489 = vmatmul.mubr.msk.f32.gmra.mxu0 %vm366_vm0, %v3873_v41 }
  0xa9   : > { %3466 = vmatmul.mubr.msk.f32.gmra.mxu1 %vm366_vm0, %v4015_v13  ;;  %3491 = vmatprep.mubr.msk.f32.mxu0 %vm366_vm0, %v1219_v16 }
  0xaa   : > { %3468 = vmatprep.mubr.msk.f32.mxu1 %vm366_vm0, %v1743_v20 }
  0xac   : > { %3492 = vmatmul.mubr.msk.f32.gmra.mxu0 %vm366_vm0, %v1220_v17 }
  0xad   : > { %3469 = vmatmul.mubr.msk.f32.gmra.mxu1 %vm366_vm0, %v1744_v21  ;;  %3494 = vmatprep.mubr.msk.f32.mxu0 %vm366_vm0, %v2006_v22 }
  0xae   : > { %3499 = vmatprep.mubr.msk.f32.mxu1 %vm366_vm0, %v3902_v51 }
  0xb0   : > { %3495 = vmatmul.mubr.msk.f32.gmra.mxu0 %vm366_vm0, %v2007_v23 }
  0xb1   : > { %3500 = vmatmul.mubr.msk.f32.vlgmr.msra.gmra.mxu1 %vm366_vm0, %v3921_v55  ;;  %3525 = vmatprep.mubr.msk.f32.mxu0 %vm366_vm0, %v3925_v56 }
  0xb2   : > { %3502 = vmatprep.mubr.msk.f32.mxu1 %vm366_vm0, %v3927_v57 }
  0xb4   : > { %3526 = vmatmul.mubr.msk.f32.vlgmr.msra.gmra.mxu0 %vm366_vm0, %v3937_v58 }
  0xb5   : > { %3503 = vmatmul.mubr.msk.f32.gmra.mxu1 %vm366_vm0, %v3941_v59  ;;  %3528 = vmatprep.mubr.msk.f32.mxu0 %vm366_vm0, %v3943_v60 }
  0xb6   : > { %3505 = vmatprep.mubr.msk.f32.mxu1 %vm366_vm0, %v3945_v61 }
  0xb8   : > { %3529 = vmatmul.mubr.msk.f32.gmra.mxu0 %vm366_vm0, %v3953_v62 }
  0xb9   : > { %3506 = vmatmul.mubr.msk.f32.gmra.mxu1 %vm366_vm0, %v3957_v63  ;;  %3531 = vmatprep.mubr.msk.f32.mxu0 %vm366_vm0, %v3959_v0 }
  0xba   : > { %3508 = vmatprep.mubr.msk.f32.mxu1 %vm366_vm0, %v3961_v1 }
  0xbc   : > { %3532 = vmatmul.mubr.msk.f32.gmra.mxu0 %vm366_vm0, %v3969_v2 }
  0xbd   : > { %3509 = vmatmul.mubr.msk.f32.gmra.mxu1 %vm366_vm0, %v3973_v3  ;;  %3534 = vmatprep.mubr.msk.f32.mxu0 %vm366_vm0, %v3975_v4 }
  0xbe   : > { %3511 = vmatprep.mubr.msk.f32.mxu1 %vm366_vm0, %v3977_v5 }
  0xc0   : > { %3535 = vmatmul.mubr.msk.f32.gmra.mxu0 %vm366_vm0, %v3985_v6 }
  0xc1   : > { %3512 = vmatmul.mubr.msk.f32.gmra.mxu1 %vm366_vm0, %v3989_v7  ;;  %3537 = vmatprep.mubr.msk.f32.mxu0 %vm366_vm0, %v3991_v8 }
  0xc2   : > { %3514 = vmatprep.mubr.msk.f32.mxu1 %vm366_vm0, %v3993_v9 }
  0xc4   : > { %3538 = vmatmul.mubr.msk.f32.gmra.mxu0 %vm366_vm0, %v4001_v10 }
  0xc5   : > { %3515 = vmatmul.mubr.msk.f32.gmra.mxu1 %vm366_vm0, %v4005_v11  ;;  %3540 = vmatprep.mubr.msk.f32.mxu0 %vm366_vm0, %v4007_v12 }
  0xc6   : > { %3517 = vmatprep.mubr.msk.f32.mxu1 %vm366_vm0, %v4086_v18 }
  0xc8   : > { %3541 = vmatmul.mubr.msk.f32.gmra.mxu0 %vm366_vm0, %v4015_v13 }
  0xc9   : > { %3518 = vmatmul.mubr.msk.f32.gmra.mxu1 %vm366_vm0, %v4093_v19  ;;  %3543 = vmatprep.mubr.msk.f32.mxu0 %vm366_vm0, %v1743_v20 }
  0xca   : > { %3520 = vmatprep.mubr.msk.f32.mxu1 %vm366_vm0, %v2268_v24 }
  0xcc   : > { %3544 = vmatmul.mubr.msk.f32.gmra.mxu0 %vm366_vm0, %v1744_v21 }
  0xcd   : > { %3521 = vmatmul.mubr.msk.f32.gmra.mxu1 %vm366_vm0, %v2269_v25  ;;  %3546 = vmatprep.mubr.msk.f32.mxu0 %vm366_vm0, %v2530_v26 }
  0xd0   : > { %3547 = vmatmul.mubr.msk.f32.gmra.mxu0 %vm366_vm0, %v2531_v27 }
 0x101   : > { %v3331_v28 = vpop.f32.mrf.mxu1 }
 0x102   : > { %674 = vst.msk [vmem:[#allocation3 + $0x48] sm:$0xff] %vm664_vm2, %v3331_v28 }
 0x103   : > { %v625_v29 = vpop.f32.mrf.mxu1 }
 0x104   : > { %673 = vst.msk [vmem:[#allocation3 + $0x40] sm:$0xff] %vm664_vm2, %v625_v29  ;;  %v3319_v30 = vpop.f32.mrf.mxu0 }
 0x105   : > { %v3334_v31 = vpop.f32.mrf.mxu1  ;;  %666 = vst.msk [vmem:[#allocation3 + $0x8] sm:$0xff] %vm664_vm2, %v3319_v30 }
 0x106   : > { %676 = vst.msk [vmem:[#allocation3 + $0x58] sm:$0xff] %vm664_vm2, %v3334_v31  ;;  %v585_v32 = vpop.f32.mrf.mxu0 }
 0x107   : > { %v635_v33 = vpop.f32.mrf.mxu1  ;;  %665 = vst.msk [vmem:[#allocation3] sm:$0xff] %vm664_vm2, %v585_v32 }
 0x108   : > { %675 = vst.msk [vmem:[#allocation3 + $0x50] sm:$0xff] %vm664_vm2, %v635_v33  ;;  %v3322_v34 = vpop.f32.mrf.mxu0 }
 0x109   : > { %v3337_v35 = vpop.f32.mrf.mxu1  ;;  %668 = vst.msk [vmem:[#allocation3 + $0x18] sm:$0xff] %vm664_vm2, %v3322_v34  ;;  %v904_v19 = vld [vmem:[#allocation3 + $0x48] sm:$0xff] }
 0x10a   : > { %678 = vst.msk [vmem:[#allocation3 + $0x68] sm:$0xff] %vm664_vm2, %v3337_v35  ;;  %v595_v36 = vpop.f32.mrf.mxu0 }
 0x10b   : > { %v645_v37 = vpop.f32.mrf.mxu1  ;;  %667 = vst.msk [vmem:[#allocation3 + $0x10] sm:$0xff] %vm664_vm2, %v595_v36  ;;  %v903_v25 = vld [vmem:[#allocation3 + $0x40] sm:$0xff] }
 0x10c   : > { %677 = vst.msk [vmem:[#allocation3 + $0x60] sm:$0xff] %vm664_vm2, %v645_v37  ;;  %v3325_v38 = vpop.f32.mrf.mxu0  ;;  %v896_v42 = vld [vmem:[#allocation3 + $0x8] sm:$0xff] }
 0x10d   : > { %v3340_v39 = vpop.f32.mrf.mxu1  ;;  %670 = vst.msk [vmem:[#allocation3 + $0x28] sm:$0xff] %vm664_vm2, %v3325_v38  ;;  %v906_v31 = vld [vmem:[#allocation3 + $0x58] sm:$0xff] }
 0x10e   : > { %680 = vst.msk [vmem:[#allocation3 + $0x78] sm:$0xff] %vm664_vm2, %v3340_v39  ;;  %v605_v40 = vpop.f32.mrf.mxu0  ;;  %v895_v45 = vld [vmem:[#allocation3] sm:$0xff] }
 0x10f   : > { %v655_v41 = vpop.f32.mrf.mxu1  ;;  %669 = vst.msk [vmem:[#allocation3 + $0x20] sm:$0xff] %vm664_vm2, %v605_v40  ;;  %v905_v37 = vld [vmem:[#allocation3 + $0x50] sm:$0xff] }
 0x110   : > { %679 = vst.msk [vmem:[#allocation3 + $0x70] sm:$0xff] %vm664_vm2, %v655_v41  ;;  %v3328_v43 = vpop.f32.mrf.mxu0  ;;  %v898_v49 = vld [vmem:[#allocation3 + $0x18] sm:$0xff] }
 0x111   : > { %v3345_v44 = vpop.f32.mrf.mxu1  ;;  %672 = vst.msk [vmem:[#allocation3 + $0x38] sm:$0xff] %vm664_vm2, %v3328_v43  ;;  %v908_v43 = vld [vmem:[#allocation3 + $0x68] sm:$0xff] }
 0x112   : > { %v912_v46 = vadd.f32 %v3345_v44, %v896_v42  ;;  %v615_v47 = vpop.f32.mrf.mxu0  ;;  %v897_v53 = vld [vmem:[#allocation3 + $0x10] sm:$0xff] }
 0x113   : > { %v816_v48 = vpop.f32.mrf.mxu1  ;;  %671 = vst.msk [vmem:[#allocation3 + $0x30] sm:$0xff] %vm664_vm2, %v615_v47 }
 0x114   : > { %928 = vst.msk [vmem:[#allocation3 + $0x8] sm:$0xff] %vm664_vm2, %v912_v46  ;;  %v911_v50 = vadd.f32 %v895_v45, %v816_v48  ;;  %v3371_v51 = vpop.f32.mrf.mxu0  ;;  %v900_v57 = vld [vmem:[#allocation3 + $0x28] sm:$0xff] }
 0x115   : > { %v3348_v52 = vpop.f32.mrf.mxu1 }
 0x116   : > { %927 = vst.msk [vmem:[#allocation3] sm:$0xff] %vm664_vm2, %v911_v50  ;;  %v914_v54 = vadd.f32 %v3348_v52, %v898_v49  ;;  %v1078_v55 = vpop.f32.mrf.mxu0  ;;  %v899_v61 = vld [vmem:[#allocation3 + $0x20] sm:$0xff] }
 0x117   : > { %v826_v56 = vpop.f32.mrf.mxu1  ;;  %v907_v49 = vld [vmem:[#allocation3 + $0x60] sm:$0xff] }
 0x118   : > { %930 = vst.msk [vmem:[#allocation3 + $0x18] sm:$0xff] %vm664_vm2, %v914_v54  ;;  %v913_v58 = vadd.f32 %v897_v53, %v826_v56  ;;  %v3374_v59 = vpop.f32.mrf.mxu0  ;;  %v902_v2 = vld [vmem:[#allocation3 + $0x38] sm:$0xff] }
 0x119   : > { %v3351_v60 = vpop.f32.mrf.mxu1 }
 0x11a   : > { %929 = vst.msk [vmem:[#allocation3 + $0x10] sm:$0xff] %vm664_vm2, %v913_v58  ;;  %v916_v62 = vadd.f32 %v3351_v60, %v900_v57  ;;  %v1088_v63 = vpop.f32.mrf.mxu0  ;;  %v901_v8 = vld [vmem:[#allocation3 + $0x30] sm:$0xff] }
 0x11b   : > { %v1158_v0 = vld [vmem:[#allocation3 + $0x8] sm:$0xff]  ;;  %v836_v1 = vpop.f32.mrf.mxu1 }
 0x11c   : > { %932 = vst.msk [vmem:[#allocation3 + $0x28] sm:$0xff] %vm664_vm2, %v916_v62  ;;  %v1174_v3 = vadd.f32 %v3371_v51, %v1158_v0  ;;  %v915_v4 = vadd.f32 %v899_v61, %v836_v1  ;;  %v3377_v5 = vpop.f32.mrf.mxu0  ;;  %v909_v61 = vld [vmem:[#allocation3 + $0x70] sm:$0xff] }
 0x11d   : > { %v1157_v6 = vld [vmem:[#allocation3] sm:$0xff]  ;;  %v3354_v7 = vpop.f32.mrf.mxu1 }
 0x11e   : > { %1190 = vst.msk [vmem:[#allocation3 + $0x8] sm:$0xff] %vm664_vm2, %v1174_v3  ;;  %931 = vst.msk [vmem:[#allocation3 + $0x20] sm:$0xff] %vm664_vm2, %v915_v4  ;;  %v1173_v9 = vadd.f32 %v1157_v6, %v1078_v55  ;;  %v918_v10 = vadd.f32 %v3354_v7, %v902_v2  ;;  %v1098_v11 = vpop.f32.mrf.mxu0  ;;  %v910_v55 = vld [vmem:[#allocation3 + $0x78] sm:$0xff] }
 0x11f   : > { %v1160_v12 = vld [vmem:[#allocation3 + $0x18] sm:$0xff]  ;;  %v846_v13 = vpop.f32.mrf.mxu1 }
 0x120   : > { %1189 = vst.msk [vmem:[#allocation3] sm:$0xff] %vm664_vm2, %v1173_v9  ;;  %934 = vst.msk [vmem:[#allocation3 + $0x38] sm:$0xff] %vm664_vm2, %v918_v10  ;;  %v1176_v14 = vadd.f32 %v3374_v59, %v1160_v12  ;;  %v917_v15 = vadd.f32 %v901_v8, %v846_v13  ;;  %v3380_v16 = vpop.f32.mrf.mxu0 }
 0x121   : > { %v1159_v17 = vld [vmem:[#allocation3 + $0x10] sm:$0xff]  ;;  %v3357_v18 = vpop.f32.mrf.mxu1 }
 0x122   : > { %1192 = vst.msk [vmem:[#allocation3 + $0x18] sm:$0xff] %vm664_vm2, %v1176_v14  ;;  %933 = vst.msk [vmem:[#allocation3 + $0x30] sm:$0xff] %vm664_vm2, %v917_v15  ;;  %v1175_v20 = vadd.f32 %v1159_v17, %v1088_v63  ;;  %v920_v21 = vadd.f32 %v3357_v18, %v904_v19  ;;  %v1108_v22 = vpop.f32.mrf.mxu0 }
 0x123   : > { %v1162_v23 = vld [vmem:[#allocation3 + $0x28] sm:$0xff]  ;;  %v856_v24 = vpop.f32.mrf.mxu1 }
 0x124   : > { %1191 = vst.msk [vmem:[#allocation3 + $0x10] sm:$0xff] %vm664_vm2, %v1175_v20  ;;  %936 = vst.msk [vmem:[#allocation3 + $0x48] sm:$0xff] %vm664_vm2, %v920_v21  ;;  %v1178_v26 = vadd.f32 %v3377_v5, %v1162_v23  ;;  %v919_v27 = vadd.f32 %v903_v25, %v856_v24  ;;  %v3383_v28 = vpop.f32.mrf.mxu0 }
 0x125   : > { %v1161_v29 = vld [vmem:[#allocation3 + $0x20] sm:$0xff]  ;;  %v3360_v30 = vpop.f32.mrf.mxu1  ;;  %v1420_v3 = vld [vmem:[#allocation3 + $0x8] sm:$0xff] }
 0x126   : > { %1194 = vst.msk [vmem:[#allocation3 + $0x28] sm:$0xff] %vm664_vm2, %v1178_v26  ;;  %935 = vst.msk [vmem:[#allocation3 + $0x40] sm:$0xff] %vm664_vm2, %v919_v27  ;;  %v1177_v32 = vadd.f32 %v1161_v29, %v1098_v11  ;;  %v922_v33 = vadd.f32 %v3360_v30, %v906_v31  ;;  %v1118_v34 = vpop.f32.mrf.mxu0 }
 0x127   : > { %v1164_v35 = vld [vmem:[#allocation3 + $0x38] sm:$0xff]  ;;  %v866_v36 = vpop.f32.mrf.mxu1  ;;  %v1419_v9 = vld [vmem:[#allocation3] sm:$0xff] }
 0x128   : > { %1193 = vst.msk [vmem:[#allocation3 + $0x20] sm:$0xff] %vm664_vm2, %v1177_v32  ;;  %938 = vst.msk [vmem:[#allocation3 + $0x58] sm:$0xff] %vm664_vm2, %v922_v33  ;;  %v1180_v38 = vadd.f32 %v3380_v16, %v1164_v35  ;;  %v921_v39 = vadd.f32 %v905_v37, %v866_v36  ;;  %v3386_v40 = vpop.f32.mrf.mxu0 }
 0x129   : > { %v1163_v41 = vld [vmem:[#allocation3 + $0x30] sm:$0xff]  ;;  %v3363_v42 = vpop.f32.mrf.mxu1  ;;  %v1422_v15 = vld [vmem:[#allocation3 + $0x18] sm:$0xff] }
 0x12a   : > { %1196 = vst.msk [vmem:[#allocation3 + $0x38] sm:$0xff] %vm664_vm2, %v1180_v38  ;;  %937 = vst.msk [vmem:[#allocation3 + $0x50] sm:$0xff] %vm664_vm2, %v921_v39  ;;  %v1179_v44 = vadd.f32 %v1163_v41, %v1108_v22  ;;  %v924_v45 = vadd.f32 %v3363_v42, %v908_v43  ;;  %v1128_v46 = vpop.f32.mrf.mxu0 }
 0x12b   : > { %v1166_v47 = vld [vmem:[#allocation3 + $0x48] sm:$0xff]  ;;  %v876_v48 = vpop.f32.mrf.mxu1  ;;  %v1421_v21 = vld [vmem:[#allocation3 + $0x10] sm:$0xff] }
 0x12c   : > { %1195 = vst.msk [vmem:[#allocation3 + $0x30] sm:$0xff] %vm664_vm2, %v1179_v44  ;;  %940 = vst.msk [vmem:[#allocation3 + $0x68] sm:$0xff] %vm664_vm2, %v924_v45  ;;  %v1182_v50 = vadd.f32 %v3383_v28, %v1166_v47  ;;  %v923_v51 = vadd.f32 %v907_v49, %v876_v48  ;;  %v3389_v52 = vpop.f32.mrf.mxu0 }
 0x12d   : > { %v1165_v53 = vld [vmem:[#allocation3 + $0x40] sm:$0xff]  ;;  %v3366_v54 = vpop.f32.mrf.mxu1  ;;  %v1424_v27 = vld [vmem:[#allocation3 + $0x28] sm:$0xff] }
 0x12e   : > { %1198 = vst.msk [vmem:[#allocation3 + $0x48] sm:$0xff] %vm664_vm2, %v1182_v50  ;;  %939 = vst.msk [vmem:[#allocation3 + $0x60] sm:$0xff] %vm664_vm2, %v923_v51  ;;  %v1181_v56 = vadd.f32 %v1165_v53, %v1118_v34  ;;  %v926_v57 = vadd.f32 %v3366_v54, %v910_v55  ;;  %v1138_v58 = vpop.f32.mrf.mxu0 }
 0x12f   : > { %v1168_v59 = vld [vmem:[#allocation3 + $0x58] sm:$0xff]  ;;  %v886_v60 = vpop.f32.mrf.mxu1  ;;  %v1423_v33 = vld [vmem:[#allocation3 + $0x20] sm:$0xff] }
 0x130   : > { %1197 = vst.msk [vmem:[#allocation3 + $0x40] sm:$0xff] %vm664_vm2, %v1181_v56  ;;  %942 = vst.msk [vmem:[#allocation3 + $0x78] sm:$0xff] %vm664_vm2, %v926_v57  ;;  %v1184_v62 = vadd.f32 %v3386_v40, %v1168_v59  ;;  %v925_v63 = vadd.f32 %v909_v61, %v886_v60  ;;  %v3392_v0 = vpop.f32.mrf.mxu0 }
 0x131   : > { %v1167_v1 = vld [vmem:[#allocation3 + $0x50] sm:$0xff]  ;;  %v3397_v2 = vpop.f32.mrf.mxu1  ;;  %v1426_v39 = vld [vmem:[#allocation3 + $0x38] sm:$0xff] }
 0x132   : > { %1200 = vst.msk [vmem:[#allocation3 + $0x58] sm:$0xff] %vm664_vm2, %v1184_v62  ;;  %941 = vst.msk [vmem:[#allocation3 + $0x70] sm:$0xff] %vm664_vm2, %v925_v63  ;;  %v1183_v4 = vadd.f32 %v1167_v1, %v1128_v46  ;;  %v1436_v5 = vadd.f32 %v3397_v2, %v1420_v3  ;;  %v1148_v6 = vpop.f32.mrf.mxu0 }
 0x133   : > { %v1170_v7 = vld [vmem:[#allocation3 + $0x68] sm:$0xff]  ;;  %v1340_v8 = vpop.f32.mrf.mxu1  ;;  %v1425_v45 = vld [vmem:[#allocation3 + $0x30] sm:$0xff] }
 0x134   : > { %1199 = vst.msk [vmem:[#allocation3 + $0x50] sm:$0xff] %vm664_vm2, %v1183_v4  ;;  %1452 = vst.msk [vmem:[#allocation3 + $0x8] sm:$0xff] %vm664_vm2, %v1436_v5  ;;  %v1186_v10 = vadd.f32 %v3389_v52, %v1170_v7  ;;  %v1435_v11 = vadd.f32 %v1419_v9, %v1340_v8  ;;  %v3423_v12 = vpop.f32.mrf.mxu0 }
 0x135   : > { %v1169_v13 = vld [vmem:[#allocation3 + $0x60] sm:$0xff]  ;;  %v3400_v14 = vpop.f32.mrf.mxu1  ;;  %v1428_v51 = vld [vmem:[#allocation3 + $0x48] sm:$0xff] }
 0x136   : > { %1202 = vst.msk [vmem:[#allocation3 + $0x68] sm:$0xff] %vm664_vm2, %v1186_v10  ;;  %1451 = vst.msk [vmem:[#allocation3] sm:$0xff] %vm664_vm2, %v1435_v11  ;;  %v1185_v16 = vadd.f32 %v1169_v13, %v1138_v58  ;;  %v1438_v17 = vadd.f32 %v3400_v14, %v1422_v15  ;;  %v1602_v18 = vpop.f32.mrf.mxu0 }
 0x137   : > { %v1172_v19 = vld [vmem:[#allocation3 + $0x78] sm:$0xff]  ;;  %v1350_v20 = vpop.f32.mrf.mxu1  ;;  %v1427_v57 = vld [vmem:[#allocation3 + $0x40] sm:$0xff] }
 0x138   : > { %1201 = vst.msk [vmem:[#allocation3 + $0x60] sm:$0xff] %vm664_vm2, %v1185_v16  ;;  %1454 = vst.msk [vmem:[#allocation3 + $0x18] sm:$0xff] %vm664_vm2, %v1438_v17  ;;  %v1188_v22 = vadd.f32 %v3392_v0, %v1172_v19  ;;  %v1437_v23 = vadd.f32 %v1421_v21, %v1350_v20  ;;  %v3426_v24 = vpop.f32.mrf.mxu0 }
 0x139   : > { %v1171_v25 = vld [vmem:[#allocation3 + $0x70] sm:$0xff]  ;;  %v3403_v26 = vpop.f32.mrf.mxu1  ;;  %v1430_v63 = vld [vmem:[#allocation3 + $0x58] sm:$0xff] }
 0x13a   : > { %1204 = vst.msk [vmem:[#allocation3 + $0x78] sm:$0xff] %vm664_vm2, %v1188_v22  ;;  %1453 = vst.msk [vmem:[#allocation3 + $0x10] sm:$0xff] %vm664_vm2, %v1437_v23  ;;  %v1187_v28 = vadd.f32 %v1171_v25, %v1148_v6  ;;  %v1440_v29 = vadd.f32 %v3403_v26, %v1424_v27  ;;  %v1612_v30 = vpop.f32.mrf.mxu0 }
 0x13b   : > { %v1682_v31 = vld [vmem:[#allocation3 + $0x8] sm:$0xff]  ;;  %v1360_v32 = vpop.f32.mrf.mxu1  ;;  %v1429_v5 = vld [vmem:[#allocation3 + $0x50] sm:$0xff] }
 0x13c   : > { %1203 = vst.msk [vmem:[#allocation3 + $0x70] sm:$0xff] %vm664_vm2, %v1187_v28  ;;  %1456 = vst.msk [vmem:[#allocation3 + $0x28] sm:$0xff] %vm664_vm2, %v1440_v29  ;;  %v1698_v34 = vadd.f32 %v3423_v12, %v1682_v31  ;;  %v1439_v35 = vadd.f32 %v1423_v33, %v1360_v32  ;;  %v3429_v36 = vpop.f32.mrf.mxu0 }
 0x13d   : > { %v1681_v37 = vld [vmem:[#allocation3] sm:$0xff]  ;;  %v3406_v38 = vpop.f32.mrf.mxu1  ;;  %v1432_v11 = vld [vmem:[#allocation3 + $0x68] sm:$0xff] }
 0x13e   : > { %1714 = vst.msk [vmem:[#allocation3 + $0x8] sm:$0xff] %vm664_vm2, %v1698_v34  ;;  %1455 = vst.msk [vmem:[#allocation3 + $0x20] sm:$0xff] %vm664_vm2, %v1439_v35  ;;  %v1697_v40 = vadd.f32 %v1681_v37, %v1602_v18  ;;  %v1442_v41 = vadd.f32 %v3406_v38, %v1426_v39  ;;  %v1622_v42 = vpop.f32.mrf.mxu0 }
 0x13f   : > { %v1684_v43 = vld [vmem:[#allocation3 + $0x18] sm:$0xff]  ;;  %v1370_v44 = vpop.f32.mrf.mxu1  ;;  %v1431_v17 = vld [vmem:[#allocation3 + $0x60] sm:$0xff] }
 0x140   : > { %1713 = vst.msk [vmem:[#allocation3] sm:$0xff] %vm664_vm2, %v1697_v40  ;;  %1458 = vst.msk [vmem:[#allocation3 + $0x38] sm:$0xff] %vm664_vm2, %v1442_v41  ;;  %v1700_v46 = vadd.f32 %v3426_v24, %v1684_v43  ;;  %v1441_v47 = vadd.f32 %v1425_v45, %v1370_v44  ;;  %v3432_v48 = vpop.f32.mrf.mxu0 }
 0x141   : > { %v1683_v49 = vld [vmem:[#allocation3 + $0x10] sm:$0xff]  ;;  %v3409_v50 = vpop.f32.mrf.mxu1  ;;  %v1434_v23 = vld [vmem:[#allocation3 + $0x78] sm:$0xff] }
 0x142   : > { %1716 = vst.msk [vmem:[#allocation3 + $0x18] sm:$0xff] %vm664_vm2, %v1700_v46  ;;  %1457 = vst.msk [vmem:[#allocation3 + $0x30] sm:$0xff] %vm664_vm2, %v1441_v47  ;;  %v1699_v52 = vadd.f32 %v1683_v49, %v1612_v30  ;;  %v1444_v53 = vadd.f32 %v3409_v50, %v1428_v51  ;;  %v1632_v54 = vpop.f32.mrf.mxu0 }
 0x143   : > { %v1686_v55 = vld [vmem:[#allocation3 + $0x28] sm:$0xff]  ;;  %v1380_v56 = vpop.f32.mrf.mxu1  ;;  %v1433_v29 = vld [vmem:[#allocation3 + $0x70] sm:$0xff] }
 0x144   : > { %1715 = vst.msk [vmem:[#allocation3 + $0x10] sm:$0xff] %vm664_vm2, %v1699_v52  ;;  %1460 = vst.msk [vmem:[#allocation3 + $0x48] sm:$0xff] %vm664_vm2, %v1444_v53  ;;  %v1702_v58 = vadd.f32 %v3429_v36, %v1686_v55  ;;  %v1443_v59 = vadd.f32 %v1427_v57, %v1380_v56  ;;  %v3435_v60 = vpop.f32.mrf.mxu0 }
 0x145   : > { %v1685_v61 = vld [vmem:[#allocation3 + $0x20] sm:$0xff]  ;;  %v3412_v62 = vpop.f32.mrf.mxu1  ;;  %v1944_v35 = vld [vmem:[#allocation3 + $0x8] sm:$0xff] }
 0x146   : > { %1718 = vst.msk [vmem:[#allocation3 + $0x28] sm:$0xff] %vm664_vm2, %v1702_v58  ;;  %1459 = vst.msk [vmem:[#allocation3 + $0x40] sm:$0xff] %vm664_vm2, %v1443_v59  ;;  %v1701_v0 = vadd.f32 %v1685_v61, %v1622_v42  ;;  %v1446_v1 = vadd.f32 %v3412_v62, %v1430_v63  ;;  %v1642_v2 = vpop.f32.mrf.mxu0 }
 0x147   : > { %v1688_v3 = vld [vmem:[#allocation3 + $0x38] sm:$0xff]  ;;  %v1390_v4 = vpop.f32.mrf.mxu1  ;;  %v1943_v41 = vld [vmem:[#allocation3] sm:$0xff] }
 0x148   : > { %1717 = vst.msk [vmem:[#allocation3 + $0x20] sm:$0xff] %vm664_vm2, %v1701_v0  ;;  %1462 = vst.msk [vmem:[#allocation3 + $0x58] sm:$0xff] %vm664_vm2, %v1446_v1  ;;  %v1704_v6 = vadd.f32 %v3432_v48, %v1688_v3  ;;  %v1445_v7 = vadd.f32 %v1429_v5, %v1390_v4  ;;  %v3438_v8 = vpop.f32.mrf.mxu0 }
 0x149   : > { %v1687_v9 = vld [vmem:[#allocation3 + $0x30] sm:$0xff]  ;;  %v3415_v10 = vpop.f32.mrf.mxu1  ;;  %v1946_v47 = vld [vmem:[#allocation3 + $0x18] sm:$0xff] }
 0x14a   : > { %1720 = vst.msk [vmem:[#allocation3 + $0x38] sm:$0xff] %vm664_vm2, %v1704_v6  ;;  %1461 = vst.msk [vmem:[#allocation3 + $0x50] sm:$0xff] %vm664_vm2, %v1445_v7  ;;  %v1703_v12 = vadd.f32 %v1687_v9, %v1632_v54  ;;  %v1448_v13 = vadd.f32 %v3415_v10, %v1432_v11  ;;  %v1652_v14 = vpop.f32.mrf.mxu0 }
 0x14b   : > { %v1690_v15 = vld [vmem:[#allocation3 + $0x48] sm:$0xff]  ;;  %v1400_v16 = vpop.f32.mrf.mxu1  ;;  %v1945_v53 = vld [vmem:[#allocation3 + $0x10] sm:$0xff] }
 0x14c   : > { %1719 = vst.msk [vmem:[#allocation3 + $0x30] sm:$0xff] %vm664_vm2, %v1703_v12  ;;  %1464 = vst.msk [vmem:[#allocation3 + $0x68] sm:$0xff] %vm664_vm2, %v1448_v13  ;;  %v1706_v18 = vadd.f32 %v3435_v60, %v1690_v15  ;;  %v1447_v19 = vadd.f32 %v1431_v17, %v1400_v16  ;;  %v3441_v20 = vpop.f32.mrf.mxu0 }
 0x14d   : > { %v1689_v21 = vld [vmem:[#allocation3 + $0x40] sm:$0xff]  ;;  %v3418_v22 = vpop.f32.mrf.mxu1  ;;  %v1948_v59 = vld [vmem:[#allocation3 + $0x28] sm:$0xff] }
 0x14e   : > { %1722 = vst.msk [vmem:[#allocation3 + $0x48] sm:$0xff] %vm664_vm2, %v1706_v18  ;;  %1463 = vst.msk [vmem:[#allocation3 + $0x60] sm:$0xff] %vm664_vm2, %v1447_v19  ;;  %v1705_v24 = vadd.f32 %v1689_v21, %v1642_v2  ;;  %v1450_v25 = vadd.f32 %v3418_v22, %v1434_v23  ;;  %v1662_v26 = vpop.f32.mrf.mxu0 }
 0x14f   : > { %v1692_v27 = vld [vmem:[#allocation3 + $0x58] sm:$0xff]  ;;  %v1410_v28 = vpop.f32.mrf.mxu1  ;;  %v1947_v1 = vld [vmem:[#allocation3 + $0x20] sm:$0xff] }
 0x150   : > { %1721 = vst.msk [vmem:[#allocation3 + $0x40] sm:$0xff] %vm664_vm2, %v1705_v24  ;;  %1466 = vst.msk [vmem:[#allocation3 + $0x78] sm:$0xff] %vm664_vm2, %v1450_v25  ;;  %v1708_v30 = vadd.f32 %v3438_v8, %v1692_v27  ;;  %v1449_v31 = vadd.f32 %v1433_v29, %v1410_v28  ;;  %v3444_v32 = vpop.f32.mrf.mxu0 }
 0x151   : > { %v1691_v33 = vld [vmem:[#allocation3 + $0x50] sm:$0xff]  ;;  %v3449_v34 = vpop.f32.mrf.mxu1  ;;  %v1950_v7 = vld [vmem:[#allocation3 + $0x38] sm:$0xff] }
 0x152   : > { %1724 = vst.msk [vmem:[#allocation3 + $0x58] sm:$0xff] %vm664_vm2, %v1708_v30  ;;  %1465 = vst.msk [vmem:[#allocation3 + $0x70] sm:$0xff] %vm664_vm2, %v1449_v31  ;;  %v1707_v36 = vadd.f32 %v1691_v33, %v1652_v14  ;;  %v1960_v37 = vadd.f32 %v3449_v34, %v1944_v35  ;;  %v1672_v38 = vpop.f32.mrf.mxu0 }
 0x153   : > { %v1694_v39 = vld [vmem:[#allocation3 + $0x68] sm:$0xff]  ;;  %v1864_v40 = vpop.f32.mrf.mxu1  ;;  %v1949_v13 = vld [vmem:[#allocation3 + $0x30] sm:$0xff] }
 0x154   : > { %1723 = vst.msk [vmem:[#allocation3 + $0x50] sm:$0xff] %vm664_vm2, %v1707_v36  ;;  %1976 = vst.msk [vmem:[#allocation3 + $0x8] sm:$0xff] %vm664_vm2, %v1960_v37  ;;  %v1710_v42 = vadd.f32 %v3441_v20, %v1694_v39  ;;  %v1959_v43 = vadd.f32 %v1943_v41, %v1864_v40  ;;  %v3475_v44 = vpop.f32.mrf.mxu0 }
 0x155   : > { %v1693_v45 = vld [vmem:[#allocation3 + $0x60] sm:$0xff]  ;;  %v3452_v46 = vpop.f32.mrf.mxu1  ;;  %v1952_v19 = vld [vmem:[#allocation3 + $0x48] sm:$0xff] }
 0x156   : > { %1726 = vst.msk [vmem:[#allocation3 + $0x68] sm:$0xff] %vm664_vm2, %v1710_v42  ;;  %1975 = vst.msk [vmem:[#allocation3] sm:$0xff] %vm664_vm2, %v1959_v43  ;;  %v1709_v48 = vadd.f32 %v1693_v45, %v1662_v26  ;;  %v1962_v49 = vadd.f32 %v3452_v46, %v1946_v47  ;;  %v2127_v50 = vpop.f32.mrf.mxu0 }
 0x157   : > { %v1696_v51 = vld [vmem:[#allocation3 + $0x78] sm:$0xff]  ;;  %v1874_v52 = vpop.f32.mrf.mxu1  ;;  %v1951_v25 = vld [vmem:[#allocation3 + $0x40] sm:$0xff] }
 0x158   : > { %1725 = vst.msk [vmem:[#allocation3 + $0x60] sm:$0xff] %vm664_vm2, %v1709_v48  ;;  %1978 = vst.msk [vmem:[#allocation3 + $0x18] sm:$0xff] %vm664_vm2, %v1962_v49  ;;  %v1712_v54 = vadd.f32 %v3444_v32, %v1696_v51  ;;  %v1961_v55 = vadd.f32 %v1945_v53, %v1874_v52  ;;  %v3478_v56 = vpop.f32.mrf.mxu0 }
 0x159   : > { %v1695_v57 = vld [vmem:[#allocation3 + $0x70] sm:$0xff]  ;;  %v3455_v58 = vpop.f32.mrf.mxu1  ;;  %v1954_v31 = vld [vmem:[#allocation3 + $0x58] sm:$0xff] }
 0x15a   : > { %1728 = vst.msk [vmem:[#allocation3 + $0x78] sm:$0xff] %vm664_vm2, %v1712_v54  ;;  %1977 = vst.msk [vmem:[#allocation3 + $0x10] sm:$0xff] %vm664_vm2, %v1961_v55  ;;  %v1711_v60 = vadd.f32 %v1695_v57, %v1672_v38  ;;  %v1964_v61 = vadd.f32 %v3455_v58, %v1948_v59  ;;  %v2137_v62 = vpop.f32.mrf.mxu0 }
 0x15b   : > { %v2207_v63 = vld [vmem:[#allocation3 + $0x8] sm:$0xff]  ;;  %v1884_v0 = vpop.f32.mrf.mxu1  ;;  %v1953_v37 = vld [vmem:[#allocation3 + $0x50] sm:$0xff] }
 0x15c   : > { %1727 = vst.msk [vmem:[#allocation3 + $0x70] sm:$0xff] %vm664_vm2, %v1711_v60  ;;  %1980 = vst.msk [vmem:[#allocation3 + $0x28] sm:$0xff] %vm664_vm2, %v1964_v61  ;;  %v2223_v2 = vadd.f32 %v3475_v44, %v2207_v63  ;;  %v1963_v3 = vadd.f32 %v1947_v1, %v1884_v0  ;;  %v3481_v4 = vpop.f32.mrf.mxu0 }
 0x15d   : > { %v2206_v5 = vld [vmem:[#allocation3] sm:$0xff]  ;;  %v3458_v6 = vpop.f32.mrf.mxu1  ;;  %v1956_v43 = vld [vmem:[#allocation3 + $0x68] sm:$0xff] }
 0x15e   : > { %2239 = vst.msk [vmem:[#allocation3 + $0x8] sm:$0xff] %vm664_vm2, %v2223_v2  ;;  %1979 = vst.msk [vmem:[#allocation3 + $0x20] sm:$0xff] %vm664_vm2, %v1963_v3  ;;  %v2222_v8 = vadd.f32 %v2206_v5, %v2127_v50  ;;  %v1966_v9 = vadd.f32 %v3458_v6, %v1950_v7  ;;  %v2147_v10 = vpop.f32.mrf.mxu0 }
 0x15f   : > { %v2209_v11 = vld [vmem:[#allocation3 + $0x18] sm:$0xff]  ;;  %v1894_v12 = vpop.f32.mrf.mxu1  ;;  %v1955_v49 = vld [vmem:[#allocation3 + $0x60] sm:$0xff] }
 0x160   : > { %2238 = vst.msk [vmem:[#allocation3] sm:$0xff] %vm664_vm2, %v2222_v8  ;;  %1982 = vst.msk [vmem:[#allocation3 + $0x38] sm:$0xff] %vm664_vm2, %v1966_v9  ;;  %v2225_v14 = vadd.f32 %v3478_v56, %v2209_v11  ;;  %v1965_v15 = vadd.f32 %v1949_v13, %v1894_v12  ;;  %v3484_v16 = vpop.f32.mrf.mxu0 }
 0x161   : > { %v2208_v17 = vld [vmem:[#allocation3 + $0x10] sm:$0xff]  ;;  %v3461_v18 = vpop.f32.mrf.mxu1  ;;  %v1958_v55 = vld [vmem:[#allocation3 + $0x78] sm:$0xff] }
 0x162   : > { %2241 = vst.msk [vmem:[#allocation3 + $0x18] sm:$0xff] %vm664_vm2, %v2225_v14  ;;  %1981 = vst.msk [vmem:[#allocation3 + $0x30] sm:$0xff] %vm664_vm2, %v1965_v15  ;;  %v2224_v20 = vadd.f32 %v2208_v17, %v2137_v62  ;;  %v1968_v21 = vadd.f32 %v3461_v18, %v1952_v19  ;;  %v2157_v22 = vpop.f32.mrf.mxu0 }
 0x163   : > { %v2211_v23 = vld [vmem:[#allocation3 + $0x28] sm:$0xff]  ;;  %v1904_v24 = vpop.f32.mrf.mxu1  ;;  %v1957_v61 = vld [vmem:[#allocation3 + $0x70] sm:$0xff] }
 0x164   : > { %2240 = vst.msk [vmem:[#allocation3 + $0x10] sm:$0xff] %vm664_vm2, %v2224_v20  ;;  %1984 = vst.msk [vmem:[#allocation3 + $0x48] sm:$0xff] %vm664_vm2, %v1968_v21  ;;  %v2227_v26 = vadd.f32 %v3481_v4, %v2211_v23  ;;  %v1967_v27 = vadd.f32 %v1951_v25, %v1904_v24  ;;  %v3487_v28 = vpop.f32.mrf.mxu0 }
 0x165   : > { %v2210_v29 = vld [vmem:[#allocation3 + $0x20] sm:$0xff]  ;;  %v3464_v30 = vpop.f32.mrf.mxu1  ;;  %v2469_v3 = vld [vmem:[#allocation3 + $0x8] sm:$0xff] }
 0x166   : > { %2243 = vst.msk [vmem:[#allocation3 + $0x28] sm:$0xff] %vm664_vm2, %v2227_v26  ;;  %1983 = vst.msk [vmem:[#allocation3 + $0x40] sm:$0xff] %vm664_vm2, %v1967_v27  ;;  %v2226_v32 = vadd.f32 %v2210_v29, %v2147_v10  ;;  %v1970_v33 = vadd.f32 %v3464_v30, %v1954_v31  ;;  %v2167_v34 = vpop.f32.mrf.mxu0 }
 0x167   : > { %v2213_v35 = vld [vmem:[#allocation3 + $0x38] sm:$0xff]  ;;  %v1914_v36 = vpop.f32.mrf.mxu1  ;;  %v2468_v9 = vld [vmem:[#allocation3] sm:$0xff] }
 0x168   : > { %2242 = vst.msk [vmem:[#allocation3 + $0x20] sm:$0xff] %vm664_vm2, %v2226_v32  ;;  %1986 = vst.msk [vmem:[#allocation3 + $0x58] sm:$0xff] %vm664_vm2, %v1970_v33  ;;  %v2229_v38 = vadd.f32 %v3484_v16, %v2213_v35  ;;  %v1969_v39 = vadd.f32 %v1953_v37, %v1914_v36  ;;  %v3490_v40 = vpop.f32.mrf.mxu0 }
 0x169   : > { %v2212_v41 = vld [vmem:[#allocation3 + $0x30] sm:$0xff]  ;;  %v3467_v42 = vpop.f32.mrf.mxu1  ;;  %v2471_v15 = vld [vmem:[#allocation3 + $0x18] sm:$0xff] }
 0x16a   : > { %2245 = vst.msk [vmem:[#allocation3 + $0x38] sm:$0xff] %vm664_vm2, %v2229_v38  ;;  %1985 = vst.msk [vmem:[#allocation3 + $0x50] sm:$0xff] %vm664_vm2, %v1969_v39  ;;  %v2228_v44 = vadd.f32 %v2212_v41, %v2157_v22  ;;  %v1972_v45 = vadd.f32 %v3467_v42, %v1956_v43  ;;  %v2177_v46 = vpop.f32.mrf.mxu0 }
 0x16b   : > { %v2215_v47 = vld [vmem:[#allocation3 + $0x48] sm:$0xff]  ;;  %v1924_v48 = vpop.f32.mrf.mxu1  ;;  %v2470_v21 = vld [vmem:[#allocation3 + $0x10] sm:$0xff] }
 0x16c   : > { %2244 = vst.msk [vmem:[#allocation3 + $0x30] sm:$0xff] %vm664_vm2, %v2228_v44  ;;  %1988 = vst.msk [vmem:[#allocation3 + $0x68] sm:$0xff] %vm664_vm2, %v1972_v45  ;;  %v2231_v50 = vadd.f32 %v3487_v28, %v2215_v47  ;;  %v1971_v51 = vadd.f32 %v1955_v49, %v1924_v48  ;;  %v3493_v52 = vpop.f32.mrf.mxu0 }
 0x16d   : > { %v2214_v53 = vld [vmem:[#allocation3 + $0x40] sm:$0xff]  ;;  %v3470_v54 = vpop.f32.mrf.mxu1  ;;  %v2473_v27 = vld [vmem:[#allocation3 + $0x28] sm:$0xff] }
 0x16e   : > { %2247 = vst.msk [vmem:[#allocation3 + $0x48] sm:$0xff] %vm664_vm2, %v2231_v50  ;;  %1987 = vst.msk [vmem:[#allocation3 + $0x60] sm:$0xff] %vm664_vm2, %v1971_v51  ;;  %v2230_v56 = vadd.f32 %v2214_v53, %v2167_v34  ;;  %v1974_v57 = vadd.f32 %v3470_v54, %v1958_v55  ;;  %v2187_v58 = vpop.f32.mrf.mxu0 }
 0x16f   : > { %v2217_v59 = vld [vmem:[#allocation3 + $0x58] sm:$0xff]  ;;  %v1934_v60 = vpop.f32.mrf.mxu1  ;;  %v2472_v33 = vld [vmem:[#allocation3 + $0x20] sm:$0xff] }
 0x170   : > { %2246 = vst.msk [vmem:[#allocation3 + $0x40] sm:$0xff] %vm664_vm2, %v2230_v56  ;;  %1990 = vst.msk [vmem:[#allocation3 + $0x78] sm:$0xff] %vm664_vm2, %v1974_v57  ;;  %v2233_v62 = vadd.f32 %v3490_v40, %v2217_v59  ;;  %v1973_v63 = vadd.f32 %v1957_v61, %v1934_v60  ;;  %v3496_v0 = vpop.f32.mrf.mxu0 }
 0x171   : > { %v2216_v1 = vld [vmem:[#allocation3 + $0x50] sm:$0xff]  ;;  %v3501_v2 = vpop.f32.mrf.mxu1  ;;  %v2475_v39 = vld [vmem:[#allocation3 + $0x38] sm:$0xff] }
 0x172   : > { %2249 = vst.msk [vmem:[#allocation3 + $0x58] sm:$0xff] %vm664_vm2, %v2233_v62  ;;  %1989 = vst.msk [vmem:[#allocation3 + $0x70] sm:$0xff] %vm664_vm2, %v1973_v63  ;;  %v2232_v4 = vadd.f32 %v2216_v1, %v2177_v46  ;;  %v2485_v5 = vadd.f32 %v3501_v2, %v2469_v3  ;;  %v2197_v6 = vpop.f32.mrf.mxu0 }
 0x173   : > { %v2219_v7 = vld [vmem:[#allocation3 + $0x68] sm:$0xff]  ;;  %v2389_v8 = vpop.f32.mrf.mxu1  ;;  %v2474_v45 = vld [vmem:[#allocation3 + $0x30] sm:$0xff] }
 0x174   : > { %2248 = vst.msk [vmem:[#allocation3 + $0x50] sm:$0xff] %vm664_vm2, %v2232_v4  ;;  %2501 = vst.msk [vmem:[#allocation3 + $0x8] sm:$0xff] %vm664_vm2, %v2485_v5  ;;  %v2235_v10 = vadd.f32 %v3493_v52, %v2219_v7  ;;  %v2484_v11 = vadd.f32 %v2468_v9, %v2389_v8  ;;  %v3527_v12 = vpop.f32.mrf.mxu0 }
 0x175   : > { %v2218_v13 = vld [vmem:[#allocation3 + $0x60] sm:$0xff]  ;;  %v3504_v14 = vpop.f32.mrf.mxu1  ;;  %v2477_v51 = vld [vmem:[#allocation3 + $0x48] sm:$0xff] }
 0x176   : > { %2251 = vst.msk [vmem:[#allocation3 + $0x68] sm:$0xff] %vm664_vm2, %v2235_v10  ;;  %2500 = vst.msk [vmem:[#allocation3] sm:$0xff] %vm664_vm2, %v2484_v11  ;;  %v2234_v16 = vadd.f32 %v2218_v13, %v2187_v58  ;;  %v2487_v17 = vadd.f32 %v3504_v14, %v2471_v15  ;;  %v2651_v18 = vpop.f32.mrf.mxu0 }
 0x177   : > { %v2221_v19 = vld [vmem:[#allocation3 + $0x78] sm:$0xff]  ;;  %v2399_v20 = vpop.f32.mrf.mxu1  ;;  %v2476_v57 = vld [vmem:[#allocation3 + $0x40] sm:$0xff] }
 0x178   : > { %2250 = vst.msk [vmem:[#allocation3 + $0x60] sm:$0xff] %vm664_vm2, %v2234_v16  ;;  %2503 = vst.msk [vmem:[#allocation3 + $0x18] sm:$0xff] %vm664_vm2, %v2487_v17  ;;  %v2237_v22 = vadd.f32 %v3496_v0, %v2221_v19  ;;  %v2486_v23 = vadd.f32 %v2470_v21, %v2399_v20  ;;  %v3530_v24 = vpop.f32.mrf.mxu0 }
 0x179   : > { %v2220_v25 = vld [vmem:[#allocation3 + $0x70] sm:$0xff]  ;;  %v3507_v26 = vpop.f32.mrf.mxu1  ;;  %v2479_v0 = vld [vmem:[#allocation3 + $0x58] sm:$0xff] }
 0x17a   : > { %2253 = vst.msk [vmem:[#allocation3 + $0x78] sm:$0xff] %vm664_vm2, %v2237_v22  ;;  %2502 = vst.msk [vmem:[#allocation3 + $0x10] sm:$0xff] %vm664_vm2, %v2486_v23  ;;  %v2236_v28 = vadd.f32 %v2220_v25, %v2197_v6  ;;  %v2489_v29 = vadd.f32 %v3507_v26, %v2473_v27  ;;  %v2661_v30 = vpop.f32.mrf.mxu0 }
 0x17b   : > { %v2731_v31 = vld [vmem:[#allocation3 + $0x8] sm:$0xff]  ;;  %v2409_v32 = vpop.f32.mrf.mxu1  ;;  %v2478_v7 = vld [vmem:[#allocation3 + $0x50] sm:$0xff] }
 0x17c   : > { %2252 = vst.msk [vmem:[#allocation3 + $0x70] sm:$0xff] %vm664_vm2, %v2236_v28  ;;  %2505 = vst.msk [vmem:[#allocation3 + $0x28] sm:$0xff] %vm664_vm2, %v2489_v29  ;;  %v2747_v34 = vadd.f32 %v3527_v12, %v2731_v31  ;;  %v2488_v35 = vadd.f32 %v2472_v33, %v2409_v32  ;;  %v3533_v36 = vpop.f32.mrf.mxu0 }
 0x17d   : > { %v2730_v37 = vld [vmem:[#allocation3] sm:$0xff]  ;;  %v3510_v38 = vpop.f32.mrf.mxu1  ;;  %v2481_v14 = vld [vmem:[#allocation3 + $0x68] sm:$0xff] }
 0x17e   : > { %2763 = vst.msk [vmem:[#allocation3 + $0x8] sm:$0xff] %vm664_vm2, %v2747_v34  ;;  %2504 = vst.msk [vmem:[#allocation3 + $0x20] sm:$0xff] %vm664_vm2, %v2488_v35  ;;  %v2746_v40 = vadd.f32 %v2730_v37, %v2651_v18  ;;  %v2491_v41 = vadd.f32 %v3510_v38, %v2475_v39  ;;  %v2671_v42 = vpop.f32.mrf.mxu0 }
 0x17f   : > { %v2733_v43 = vld [vmem:[#allocation3 + $0x18] sm:$0xff]  ;;  %v2419_v44 = vpop.f32.mrf.mxu1  ;;  %v2480_v21 = vld [vmem:[#allocation3 + $0x60] sm:$0xff] }
 0x180   : > { %2762 = vst.msk [vmem:[#allocation3] sm:$0xff] %vm664_vm2, %v2746_v40  ;;  %2507 = vst.msk [vmem:[#allocation3 + $0x38] sm:$0xff] %vm664_vm2, %v2491_v41  ;;  %v2749_v46 = vadd.f32 %v3530_v24, %v2733_v43  ;;  %v2490_v47 = vadd.f32 %v2474_v45, %v2419_v44  ;;  %v3536_v48 = vpop.f32.mrf.mxu0 }
 0x181   : > { %v2732_v49 = vld [vmem:[#allocation3 + $0x10] sm:$0xff]  ;;  %v3513_v50 = vpop.f32.mrf.mxu1  ;;  %v2483_v27 = vld [vmem:[#allocation3 + $0x78] sm:$0xff] }
 0x182   : > { %2765 = vst.msk [vmem:[#allocation3 + $0x18] sm:$0xff] %vm664_vm2, %v2749_v46  ;;  %2506 = vst.msk [vmem:[#allocation3 + $0x30] sm:$0xff] %vm664_vm2, %v2490_v47  ;;  %v2748_v52 = vadd.f32 %v2732_v49, %v2661_v30  ;;  %v2493_v53 = vadd.f32 %v3513_v50, %v2477_v51  ;;  %v2681_v54 = vpop.f32.mrf.mxu0 }
 0x183   : > { %v2735_v55 = vld [vmem:[#allocation3 + $0x28] sm:$0xff]  ;;  %v2429_v56 = vpop.f32.mrf.mxu1  ;;  %v2482_v34 = vld [vmem:[#allocation3 + $0x70] sm:$0xff] }
 0x184   : > { %2764 = vst.msk [vmem:[#allocation3 + $0x10] sm:$0xff] %vm664_vm2, %v2748_v52  ;;  %2509 = vst.msk [vmem:[#allocation3 + $0x48] sm:$0xff] %vm664_vm2, %v2493_v53  ;;  %v2751_v58 = vadd.f32 %v3533_v36, %v2735_v55  ;;  %v2492_v59 = vadd.f32 %v2476_v57, %v2429_v56  ;;  %v3539_v60 = vpop.f32.mrf.mxu0 }
 0x185   : > { %v2779_v61 = vld [vmem:[#allocation3 + $0x8] sm:$0xff]  ;;  %v2734_v62 = vld [vmem:[#allocation3 + $0x20] sm:$0xff]  ;;  %v3516_v63 = vpop.f32.mrf.mxu1 }
 0x186   : > { %2795 = vst.msk [vmem:[%s3748_s16 + $0x8] sm:$0xff] %vm664_vm2, %v2779_v61  ;;  %2767 = vst.msk [vmem:[#allocation3 + $0x28] sm:$0xff] %vm664_vm2, %v2751_v58  ;;  %v2750_v1 = vadd.f32 %v2734_v62, %v2671_v42  ;;  %v2495_v2 = vadd.f32 %v3516_v63, %v2479_v0  ;;  %v2691_v3 = vpop.f32.mrf.mxu0 }
 0x187   : > { %2508 = vst.msk [vmem:[#allocation3 + $0x40] sm:$0xff] %vm664_vm2, %v2492_v59  ;;  %v2778_v4 = vld [vmem:[#allocation3] sm:$0xff]  ;;  %v2737_v5 = vld [vmem:[#allocation3 + $0x38] sm:$0xff]  ;;  %v2439_v6 = vpop.f32.mrf.mxu1 }
 0x188   : > { %2794 = vst.msk [vmem:[%s3748_s16] sm:$0xff] %vm664_vm2, %v2778_v4  ;;  %2766 = vst.msk [vmem:[#allocation3 + $0x20] sm:$0xff] %vm664_vm2, %v2750_v1  ;;  %v2753_v8 = vadd.f32 %v3536_v48, %v2737_v5  ;;  %v2494_v9 = vadd.f32 %v2478_v7, %v2439_v6  ;;  %v3542_v10 = vpop.f32.mrf.mxu0 }
 0x189   : > { %2511 = vst.msk [vmem:[#allocation3 + $0x58] sm:$0xff] %vm664_vm2, %v2495_v2  ;;  %v2781_v11 = vld [vmem:[#allocation3 + $0x18] sm:$0xff]  ;;  %v2736_v12 = vld [vmem:[#allocation3 + $0x30] sm:$0xff]  ;;  %v3519_v13 = vpop.f32.mrf.mxu1 }
 0x18a   : > { %2797 = vst.msk [vmem:[%s3748_s16 + $0x18] sm:$0xff] %vm664_vm2, %v2781_v11  ;;  %2769 = vst.msk [vmem:[#allocation3 + $0x38] sm:$0xff] %vm664_vm2, %v2753_v8  ;;  %v2752_v15 = vadd.f32 %v2736_v12, %v2681_v54  ;;  %v2497_v16 = vadd.f32 %v3519_v13, %v2481_v14  ;;  %v2701_v17 = vpop.f32.mrf.mxu0 }
 0x18b   : > { %2510 = vst.msk [vmem:[#allocation3 + $0x50] sm:$0xff] %vm664_vm2, %v2494_v9  ;;  %v2780_v18 = vld [vmem:[#allocation3 + $0x10] sm:$0xff]  ;;  %v2739_v19 = vld [vmem:[#allocation3 + $0x48] sm:$0xff]  ;;  %v2449_v20 = vpop.f32.mrf.mxu1 }
 0x18c   : > { %2796 = vst.msk [vmem:[%s3748_s16 + $0x10] sm:$0xff] %vm664_vm2, %v2780_v18  ;;  %2768 = vst.msk [vmem:[#allocation3 + $0x30] sm:$0xff] %vm664_vm2, %v2752_v15  ;;  %v2755_v22 = vadd.f32 %v3539_v60, %v2739_v19  ;;  %v2496_v23 = vadd.f32 %v2480_v21, %v2449_v20  ;;  %v3545_v28 = vpop.f32.mrf.mxu0 }
 0x18d   : > { %2513 = vst.msk [vmem:[#allocation3 + $0x68] sm:$0xff] %vm664_vm2, %v2497_v16  ;;  %v2783_v24 = vld [vmem:[#allocation3 + $0x28] sm:$0xff]  ;;  %v3522_v26 = vpop.f32.mrf.mxu1 }
 0x18e   : > { %v2738_v25 = vld [vmem:[#allocation3 + $0x40] sm:$0xff]  ;;  %2799 = vst.msk [vmem:[%s3748_s16 + $0x28] sm:$0xff] %vm664_vm2, %v2783_v24  ;;  %2771 = vst.msk [vmem:[#allocation3 + $0x48] sm:$0xff] %vm664_vm2, %v2755_v22  ;;  %v2499_v30 = vadd.f32 %v3522_v26, %v2483_v27  ;;  %v2711_v39 = vpop.f32.mrf.mxu0 }
 0x18f   : > { %2512 = vst.msk [vmem:[#allocation3 + $0x60] sm:$0xff] %vm664_vm2, %v2496_v23  ;;  %v2754_v29 = vadd.f32 %v2738_v25, %v2691_v3  ;;  %v2782_v31 = vld [vmem:[#allocation3 + $0x20] sm:$0xff]  ;;  %v2459_v33 = vpop.f32.mrf.mxu1 }
 0x190   : > { %v2741_v32 = vld [vmem:[#allocation3 + $0x58] sm:$0xff]  ;;  %2798 = vst.msk [vmem:[%s3748_s16 + $0x20] sm:$0xff] %vm664_vm2, %v2782_v31  ;;  %2515 = vst.msk [vmem:[#allocation3 + $0x78] sm:$0xff] %vm664_vm2, %v2499_v30  ;;  %v2498_v36 = vadd.f32 %v2482_v34, %v2459_v33  ;;  %v3548_v46 = vpop.f32.mrf.mxu0 }
 0x191   : > { %2770 = vst.msk [vmem:[#allocation3 + $0x40] sm:$0xff] %vm664_vm2, %v2754_v29  ;;  %v2757_v35 = vadd.f32 %v3542_v10, %v2741_v32  ;;  %v2785_v37 = vld [vmem:[#allocation3 + $0x38] sm:$0xff] }
 0x192   : > { %v2740_v38 = vld [vmem:[#allocation3 + $0x50] sm:$0xff]  ;;  %2801 = vst.msk [vmem:[%s3748_s16 + $0x38] sm:$0xff] %vm664_vm2, %v2785_v37  ;;  %2514 = vst.msk [vmem:[#allocation3 + $0x70] sm:$0xff] %vm664_vm2, %v2498_v36  ;;  %v2721_v52 = vpop.f32.mrf.mxu0 }
 0x193   : > { %2773 = vst.msk [vmem:[#allocation3 + $0x58] sm:$0xff] %vm664_vm2, %v2757_v35  ;;  %v2756_v40 = vadd.f32 %v2740_v38, %v2701_v17  ;;  %v2784_v41 = vld [vmem:[#allocation3 + $0x30] sm:$0xff] }
 0x194   : > { %v2743_v42 = vld [vmem:[#allocation3 + $0x68] sm:$0xff]  ;;  %2800 = vst.msk [vmem:[%s3748_s16 + $0x30] sm:$0xff] %vm664_vm2, %v2784_v41 }
 0x195   : > { %2772 = vst.msk [vmem:[#allocation3 + $0x50] sm:$0xff] %vm664_vm2, %v2756_v40  ;;  %v2759_v43 = vadd.f32 %v3545_v28, %v2743_v42  ;;  %v2787_v44 = vld [vmem:[#allocation3 + $0x48] sm:$0xff] }
 0x196   : > { %v2742_v45 = vld [vmem:[#allocation3 + $0x60] sm:$0xff]  ;;  %2803 = vst.msk [vmem:[%s3748_s16 + $0x48] sm:$0xff] %vm664_vm2, %v2787_v44 }
 0x197   : > { %2775 = vst.msk [vmem:[#allocation3 + $0x68] sm:$0xff] %vm664_vm2, %v2759_v43  ;;  %v2758_v47 = vadd.f32 %v2742_v45, %v2711_v39  ;;  %v2745_v49 = vld [vmem:[#allocation3 + $0x78] sm:$0xff] }
 0x198   : > { %v2786_v48 = vld [vmem:[#allocation3 + $0x40] sm:$0xff]  ;;  %v2761_v50 = vadd.f32 %v3548_v46, %v2745_v49 }
 0x199   : > { %2802 = vst.msk [vmem:[%s3748_s16 + $0x40] sm:$0xff] %vm664_vm2, %v2786_v48  ;;  %2774 = vst.msk [vmem:[#allocation3 + $0x60] sm:$0xff] %vm664_vm2, %v2758_v47  ;;  %v2744_v53 = vld [vmem:[#allocation3 + $0x70] sm:$0xff] }
 0x19a   : > { %v2789_v51 = vld [vmem:[#allocation3 + $0x58] sm:$0xff]  ;;  %2777 = vst.msk [vmem:[#allocation3 + $0x78] sm:$0xff] %vm664_vm2, %v2761_v50  ;;  %v2760_v54 = vadd.f32 %v2744_v53, %v2721_v52 }
 0x19b   : > { %2805 = vst.msk [vmem:[%s3748_s16 + $0x58] sm:$0xff] %vm664_vm2, %v2789_v51 }
 0x19c   : > { %v2788_v55 = vld [vmem:[#allocation3 + $0x50] sm:$0xff]  ;;  %2776 = vst.msk [vmem:[#allocation3 + $0x70] sm:$0xff] %vm664_vm2, %v2760_v54 }
 0x19d   : > { %2804 = vst.msk [vmem:[%s3748_s16 + $0x50] sm:$0xff] %vm664_vm2, %v2788_v55 }
 0x19e   : > { %v2791_v56 = vld [vmem:[#allocation3 + $0x68] sm:$0xff] }
 0x19f   : > { %2807 = vst.msk [vmem:[%s3748_s16 + $0x68] sm:$0xff] %vm664_vm2, %v2791_v56 }
 0x1a0   : > { %v2790_v57 = vld [vmem:[#allocation3 + $0x60] sm:$0xff] }
 0x1a1   : > { %2806 = vst.msk [vmem:[%s3748_s16 + $0x60] sm:$0xff] %vm664_vm2, %v2790_v57  ;;  %v2793_v58 = vld [vmem:[#allocation3 + $0x78] sm:$0xff] }
 0x1a2   : > { %2809 = vst.msk [vmem:[%s3748_s16 + $0x78] sm:$0xff] %vm664_vm2, %v2793_v58 }
 0x1a3   : > { %v2792_v59 = vld [vmem:[#allocation3 + $0x70] sm:$0xff] }
 0x1a4   : > { %2808 = vst.msk [vmem:[%s3748_s16 + $0x70] sm:$0xff] %vm664_vm2, %v2792_v59 }
 0x1a5 PF: > { %s14_s19 = sadd.s32 1, %s3632_s19   ;;  %s4412_s15 = smov %s3624_s17 }
 0x1a6   : > { %p11_p0 = scmp.ge.s32.totalorder %s14_s19, 6   ;;  %s4413_s16 = smov %s3628_s18 }
 0x1a7   : > { %s4414_s17 = smov %s4417_s20  ;;  %s4415_s18 = smov %s4421_s21 }
 0x1a8   :  { %13 = sbr.rel (!%p11_p0) target bundleno = 3 (0x3), region = 100 }

</bundles_post_ra>
